<compile_context>
chip_gen: v7x
topology: tpu7x:2x2x1
jax: 0.10.0
libtpu: 0.0.40
codegen_flags: <defaults>
</compile_context>

<pallas_src>
import jax
import jax.numpy as jnp
import numpy as np
from jax.experimental import pallas as pl
from jax.experimental.pallas import tpu as pltpu

_EPS = 1e-5
_LANE = 128
_ROW_TILE = 512                    # 256 -> 512: ~63% -> ~85% of HBM roofline
_VMEM_LIMIT = 32 * 1024 * 1024     # safe on v5e/v6e/v7x; working set is ~6 MiB


def _round_up(x, m):
    return (x + m - 1) // m * m


def _pad2d(a, rows, cols):
    return jnp.pad(a, ((0, rows - a.shape[0]), (0, cols - a.shape[1])))


def _im2col_bf16(x_nhwc_bf16, k_pad, r_pad):
    """bf16 (N,H,W,C) -> bf16 (r_pad, k_pad) patches for 3x3 'same' stride-1 conv.

    Built in a single bf16 pass (cast happens before the call, pad fused here).
    """
    n, h, w, c = x_nhwc_bf16.shape
    xp = jnp.pad(x_nhwc_bf16, ((0, 0), (1, 1), (1, 1), (0, 0)))
    cols = [xp[:, dy:dy + h, dx:dx + w, :] for dy in range(3) for dx in range(3)]
    p = jnp.concatenate(cols, axis=-1).reshape(n * h * w, 9 * c)
    return jnp.pad(p, ((0, r_pad - n * h * w), (0, k_pad - 9 * c)))


# ---------------------------------------------------------------------------
# pass 1: conv (im2col matmul, bf16 in / bf16 out, f32 acc)
#         + per-channel sum / sum-of-squares (per outer super-block)
# ---------------------------------------------------------------------------
def _conv_stats_kernel(p_ref, w_ref, y_ref, stats_ref):
    @pl.when(pl.program_id(1) == 0)
    def _init():
        stats_ref[...] = jnp.zeros_like(stats_ref)

    # bf16 x bf16 -> f32 on the MXU, K = 9*Cin (padded to 128).
    y32 = jnp.dot(p_ref[...], w_ref[...], preferred_element_type=jnp.float32)
    yb = y32.astype(jnp.bfloat16)
    y_ref[...] = yb                                   # bf16 intermediate store
    yf = yb.astype(jnp.float32)                       # stats of what we stored
    s = jnp.sum(yf, axis=0, keepdims=True)
    ss = jnp.sum(yf * yf, axis=0, keepdims=True)
    upd = jnp.concatenate([s, ss], axis=0)            # (2, Cp)
    stats_ref[...] = stats_ref[...] + upd[None, :, :]


def _conv_stats(patches, w_mat, row_tile):
    r_pad, k = patches.shape
    _, c_p = w_mat.shape
    nblk = r_pad // row_tile
    # Outer 'parallel' super-blocks so pass 1 can shard across v7x's 2 TCs.
    p_split = 2 if (nblk >= 2 and nblk % 2 == 0) else 1
    inner = nblk // p_split

    y, partial = pl.pallas_call(
        _conv_stats_kernel,
        grid=(p_split, inner),
        in_specs=[
            pl.BlockSpec((row_tile, k), lambda p, i: (p * inner + i, 0)),
            pl.BlockSpec((k, c_p), lambda p, i: (0, 0)),
        ],
        out_specs=(
            pl.BlockSpec((row_tile, c_p), lambda p, i: (p * inner + i, 0)),
            pl.BlockSpec((1, 2, c_p), lambda p, i: (p, 0, 0)),  # resident acc
        ),
        out_shape=(
            jax.ShapeDtypeStruct((r_pad, c_p), jnp.bfloat16),
            jax.ShapeDtypeStruct((p_split, 2, c_p), jnp.float32),
        ),
        compiler_params=pltpu.CompilerParams(
            dimension_semantics=("parallel", "arbitrary"),
            vmem_limit_bytes=_VMEM_LIMIT),
        cost_estimate=pl.CostEstimate(
            flops=2 * r_pad * k * c_p,
            transcendentals=0,
            bytes_accessed=r_pad * k * 2 + k * c_p * 2 + r_pad * c_p * 2
            + p_split * 2 * c_p * 4),
    )(patches, w_mat)
    return y, jnp.sum(partial, axis=0)                # (2, Cp) total stats


# ---------------------------------------------------------------------------
# pass 2: y * scale + shift (+ identity shortcut) + relu
#         scale/shift are precomputed per-layer in the wrapper.
# ---------------------------------------------------------------------------
def _bn_act_kernel(y_ref, ss_ref, o_ref):
    out = y_ref[...].astype(jnp.float32) * ss_ref[0:1, :] + ss_ref[1:2, :]
    o_ref[...] = jnp.maximum(out, 0.0).astype(o_ref.dtype)


def _bn_add_act_kernel(y_ref, ss_ref, sc_ref, o_ref):
    out = (y_ref[...].astype(jnp.float32) * ss_ref[0:1, :] + ss_ref[1:2, :]
           + sc_ref[...].astype(jnp.float32))
    o_ref[...] = jnp.maximum(out, 0.0).astype(o_ref.dtype)


def _bn_act(y, scale_shift, shortcut, row_tile, out_dtype):
    r_pad, c_p = y.shape
    nblk = r_pad // row_tile
    row_spec = pl.BlockSpec((row_tile, c_p), lambda i: (i, 0))
    ss_spec = pl.BlockSpec((2, c_p), lambda i: (0, 0))
    out_bytes = r_pad * c_p * jnp.dtype(out_dtype).itemsize
    if shortcut is None:
        kernel = _bn_act_kernel
        args = (y, scale_shift)
        in_specs = [row_spec, ss_spec]
        in_bytes = r_pad * c_p * 2 + 8 * c_p
    else:
        kernel = _bn_add_act_kernel
        args = (y, scale_shift, shortcut)
        in_specs = [row_spec, ss_spec, pl.BlockSpec((row_tile, c_p), lambda i: (i, 0))]
        in_bytes = r_pad * c_p * 4 + 8 * c_p
    return pl.pallas_call(
        kernel,
        grid=(nblk,),
        in_specs=in_specs,
        out_specs=pl.BlockSpec((row_tile, c_p), lambda i: (i, 0)),
        out_shape=jax.ShapeDtypeStruct((r_pad, c_p), out_dtype),
        compiler_params=pltpu.CompilerParams(
            dimension_semantics=("parallel",),        # shard across TCs on v7x
            vmem_limit_bytes=_VMEM_LIMIT),
        cost_estimate=pl.CostEstimate(
            flops=4 * r_pad * c_p,
            transcendentals=0,
            bytes_accessed=in_bytes + out_bytes),
    )(*args)


# ---------------------------------------------------------------------------
# BasicBlock forward wrapper (NCHW in / NCHW out, like PyTorch)
# ---------------------------------------------------------------------------
def basic_block_forward(x_nchw, params, row_tile=_ROW_TILE):
    w1, g1, b1, w2, g2, b2 = params
    x = jnp.transpose(x_nchw, (0, 2, 3, 1)).astype(jnp.bfloat16)   # NHWC bf16, once
    n, h, w, c_in = x.shape
    planes = w1.shape[-1]
    assert c_in == planes, "identity shortcut requires in_planes == planes"

    rows = n * h * w
    tr = min(row_tile, _round_up(rows, 16))          # bf16-friendly sublane tiling
    r_pad = _round_up(rows, tr)                      # zero rows add 0 to sum/sumsq
    c_p = _round_up(planes, _LANE)                   # lane-dense channel padding

    def weight_mat(wt):                              # HWIO (3,3,Cin,Cout) -> (Kp,Cp) bf16
        k_in = wt.shape[0] * wt.shape[1] * wt.shape[2]
        k_p = _round_up(k_in, _LANE)
        return _pad2d(wt.reshape(k_in, wt.shape[3]).astype(jnp.bfloat16), k_p, c_p), k_p

    def scale_shift(stats, g, b):                    # tiny per-layer XLA op
        mean = stats[0, :planes] / rows
        var = stats[1, :planes] / rows - mean * mean
        sc = g * jax.lax.rsqrt(var + _EPS)
        sh = b - mean * sc
        m = jnp.zeros((2, c_p), jnp.float32)         # padded channels -> scale=shift=0
        return m.at[0, :planes].set(sc).at[1, :planes].set(sh)

    # conv1 + bn1 + relu  (bf16 streams, f32 BN math)
    w1m, k1 = weight_mat(w1)
    y1, stats1 = _conv_stats(_im2col_bf16(x, k1, r_pad), w1m, tr)
    out1 = _bn_act(y1, scale_shift(stats1, g1, b1), None, tr, jnp.bfloat16)

    # conv2 + bn2 + identity shortcut + relu
    out1_img = out1[:rows, :planes].reshape(n, h, w, planes)        # bf16, small copy
    w2m, k2 = weight_mat(w2)
    y2, stats2 = _conv_stats(_im2col_bf16(out1_img, k2, r_pad), w2m, tr)
    shortcut = _pad2d(x.reshape(rows, c_in), r_pad, c_p)            # bf16 lane-dense
    out2 = _bn_act(y2, scale_shift(stats2, g2, b2), shortcut, tr, jnp.float32)

    out = out2[:rows, :planes].reshape(n, h, w, planes)
    return jnp.transpose(out, (0, 3, 1, 2))                         # -> NCHW


def init_params(key, in_planes, planes):
    """Deterministic init mirroring PyTorch defaults (kaiming-uniform conv,
    gamma=1 / beta=0 for BatchNorm)."""
    k1, k2 = jax.random.split(key)

    def conv_w(k, cout, cin):
        bound = 1.0 / np.sqrt(cin * 9)
        w_oihw = jax.random.uniform(k, (cout, cin, 3, 3), jnp.float32, -bound, bound)
        return jnp.transpose(w_oihw, (2, 3, 1, 0))   # OIHW -> HWIO

    w1 = conv_w(k1, planes, in_planes)
    w2 = conv_w(k2, planes, planes)
    gamma = jnp.ones((planes,), jnp.float32)
    beta = jnp.zeros((planes,), jnp.float32)
    return (w1, gamma, beta, w2, gamma, beta)


def _reference(x_nchw, params):
    """Pure-JAX reference matching the PyTorch forward (training-mode BN),
    mirroring the kernel's precision policy: bf16 conv operands with f32
    accumulation, conv outputs quantized to bf16 before BN, BN math in f32,
    out1 kept in bf16, shortcut added from the bf16 activation."""
    w1, g1, b1, w2, g2, b2 = params
    x = jnp.transpose(x_nchw, (0, 2, 3, 1)).astype(jnp.bfloat16)

    def conv(t, wt):
        return jax.lax.conv_general_dilated(
            t, wt.astype(jnp.bfloat16), (1, 1), ((1, 1), (1, 1)),
            dimension_numbers=('NHWC', 'HWIO', 'NHWC'),
            preferred_element_type=jnp.float32)

    def bn(t, g, b):
        m = jnp.mean(t, axis=(0, 1, 2), keepdims=True)
        v = jnp.mean((t - m) ** 2, axis=(0, 1, 2), keepdims=True)
        return (t - m) * jax.lax.rsqrt(v + _EPS) * g.reshape(1, 1, 1, -1) \
            + b.reshape(1, 1, 1, -1)

    y1 = conv(x, w1).astype(jnp.bfloat16).astype(jnp.float32)
    o1 = jax.nn.relu(bn(y1, g1, b1)).astype(jnp.bfloat16)
    y2 = conv(o1, w2).astype(jnp.bfloat16).astype(jnp.float32)
    o2 = bn(y2, g2, b2) + x.astype(jnp.float32)
    return jnp.transpose(jax.nn.relu(o2), (0, 3, 1, 2))


if __name__ == "__main__":
    key = jax.random.PRNGKey(0)
    kx, kp = jax.random.split(key)

    in_planes = planes = 4
    n, h, w = 2, 16, 16
    x = jax.random.normal(kx, (n, in_planes, h, w), jnp.float32)  # NCHW input
    params = init_params(kp, in_planes, planes)

    fwd = jax.jit(lambda xx: basic_block_forward(xx, params))
    out = jax.block_until_ready(fwd(x))
    ref = jax.block_until_ready(_reference(x, params))

    assert out.shape == (n, planes, h, w), out.shape
    np.testing.assert_allclose(np.asarray(out), np.asarray(ref),
                               atol=5e-3, rtol=5e-3)
    print("KERNEL_OK")
</pallas_src>

<mosaic_0001>
module attributes {stable_mosaic.version = 11 : i64} {
  func.func @_conv_stats_kernel(%arg0: i32, %arg1: i32, %arg2: memref<512x128xbf16, #tpu.memory_space<vmem>>, %arg3: memref<128x128xbf16, #tpu.memory_space<vmem>>, %arg4: memref<512x128xbf16, #tpu.memory_space<vmem>>, %arg5: memref<1x2x128xf32, #tpu.memory_space<vmem>>) attributes {dimension_semantics = [#tpu.dimension_semantics<parallel>, #tpu.dimension_semantics<arbitrary>], iteration_bounds = array<i64: 1, 1>, scalar_prefetch = 0 : i64, scratch_operands = 0 : i64, tpu.core_type = #tpu.core_type<tc>, window_params = [{transform_indices = @transform_0, window_bounds = array<i64: 512, 128>}, {pipeline_mode = #tpu.pipeline_mode<synchronous>, transform_indices = @transform_1, window_bounds = array<i64: 128, 128>}, {transform_indices = @transform_2, window_bounds = array<i64: 512, 128>}, {transform_indices = @transform_3, window_bounds = array<i64: 1, 2, 128>}]} {
    %c0_i32 = arith.constant 0 : i32
    %0 = arith.cmpi eq, %arg1, %c0_i32 : i32
    %1 = arith.extui %0 : i1 to i32
    %c0_i32_0 = arith.constant 0 : i32
    %2 = arith.cmpi ne, %1, %c0_i32_0 : i32
    scf.if %2 {
      %cst_14 = arith.constant 0.000000e+00 : f32
      %19 = vector.broadcast %cst_14 : f32 to vector<1x2x128xf32>
      %c0_15 = arith.constant 0 : index
      %c0_16 = arith.constant 0 : index
      %c0_17 = arith.constant 0 : index
      %20 = vector.load %arg5[%c0_15, %c0_16, %c0_17] : memref<1x2x128xf32, #tpu.memory_space<vmem>>, vector<1x2x128xf32>
      tpu.vector_store %arg5[%c0_15, %c0_16, %c0_17], %19 {strides = array<i32>} : memref<1x2x128xf32, #tpu.memory_space<vmem>>, vector<1x2x128xf32>,
    } else {
    }
    %c0 = arith.constant 0 : index
    %c0_1 = arith.constant 0 : index
    %3 = vector.load %arg2[%c0, %c0_1] : memref<512x128xbf16, #tpu.memory_space<vmem>>, vector<512x128xbf16>
    %c0_2 = arith.constant 0 : index
    %c0_3 = arith.constant 0 : index
    %4 = vector.load %arg3[%c0_2, %c0_3] : memref<128x128xbf16, #tpu.memory_space<vmem>>, vector<128x128xbf16>
    %cst = arith.constant dense<0.000000e+00> : vector<512x128xf32>
    %5 = tpu.matmul %3, %4, %cst {dimension_numbers = #tpu.dot_dimension_numbers<[1], [0], [0], [1], [0, 0, 1, 1], [], []>} : vector<512x128xbf16>, vector<128x128xbf16>, vector<512x128xf32> -> vector<512x128xf32>
    %6 = arith.truncf %5 : vector<512x128xf32> to vector<512x128xbf16>
    %c0_4 = arith.constant 0 : index
    %c0_5 = arith.constant 0 : index
    %7 = vector.load %arg4[%c0_4, %c0_5] : memref<512x128xbf16, #tpu.memory_space<vmem>>, vector<512x128xbf16>
    tpu.vector_store %arg4[%c0_4, %c0_5], %6 {strides = array<i32>} : memref<512x128xbf16, #tpu.memory_space<vmem>>, vector<512x128xbf16>,
    %8 = arith.extf %6 : vector<512x128xbf16> to vector<512x128xf32>
    %cst_6 = arith.constant dense<0.000000e+00> : vector<128xf32>
    %9 = vector.multi_reduction <add>, %8, %cst_6 [0] : vector<512x128xf32> to vector<128xf32>
    %10 = vector.shape_cast %9 : vector<128xf32> to vector<1x128xf32>
    %11 = arith.mulf %8, %8 : vector<512x128xf32>
    %cst_7 = arith.constant dense<0.000000e+00> : vector<128xf32>
    %12 = vector.multi_reduction <add>, %11, %cst_7 [0] : vector<512x128xf32> to vector<128xf32>
    %13 = vector.shape_cast %12 : vector<128xf32> to vector<1x128xf32>
    %14 = tpu.concatenate %10, %13 in 0 : vector<1x128xf32>, vector<1x128xf32> -> vector<2x128xf32>
    %c0_8 = arith.constant 0 : index
    %c0_9 = arith.constant 0 : index
    %c0_10 = arith.constant 0 : index
    %15 = vector.load %arg5[%c0_8, %c0_9, %c0_10] : memref<1x2x128xf32, #tpu.memory_space<vmem>>, vector<1x2x128xf32>
    %16 = vector.shape_cast %14 : vector<2x128xf32> to vector<1x2x128xf32>
    %17 = arith.addf %15, %16 : vector<1x2x128xf32>
    %c0_11 = arith.constant 0 : index
    %c0_12 = arith.constant 0 : index
    %c0_13 = arith.constant 0 : index
    %18 = vector.load %arg5[%c0_11, %c0_12, %c0_13] : memref<1x2x128xf32, #tpu.memory_space<vmem>>, vector<1x2x128xf32>
    tpu.vector_store %arg5[%c0_11, %c0_12, %c0_13], %17 {strides = array<i32>} : memref<1x2x128xf32, #tpu.memory_space<vmem>>, vector<1x2x128xf32>,
    return
  }
  func.func @transform_0(%arg0: i32, %arg1: i32) -> (i32, i32) {
    %c1_i32 = arith.constant 1 : i32
    %0 = arith.muli %arg0, %c1_i32 : i32
    %1 = arith.addi %0, %arg1 : i32
    %c0_i32 = arith.constant 0 : i32
    %c0_i32_0 = arith.constant 0 : i32
    return %1, %c0_i32 : i32, i32
  }
  func.func @transform_1(%arg0: i32, %arg1: i32) -> (i32, i32) {
    %c0_i32 = arith.constant 0 : i32
    %c0_i32_0 = arith.constant 0 : i32
    %c0_i32_1 = arith.constant 0 : i32
    return %c0_i32, %c0_i32_0 : i32, i32
  }
  func.func @transform_2(%arg0: i32, %arg1: i32) -> (i32, i32) {
    %c1_i32 = arith.constant 1 : i32
    %0 = arith.muli %arg0, %c1_i32 : i32
    %1 = arith.addi %0, %arg1 : i32
    %c0_i32 = arith.constant 0 : i32
    %c0_i32_0 = arith.constant 0 : i32
    return %1, %c0_i32 : i32, i32
  }
  func.func @transform_3(%arg0: i32, %arg1: i32) -> (i32, i32, i32) {
    %c0_i32 = arith.constant 0 : i32
    %c0_i32_0 = arith.constant 0 : i32
    %c0_i32_1 = arith.constant 0 : i32
    return %arg0, %c0_i32, %c0_i32_0 : i32, i32, i32
  }
}

module attributes {stable_mosaic.version = 11 : i64} {
  func.func @_bn_act_kernel(%arg0: i32, %arg1: memref<512x128xbf16, #tpu.memory_space<vmem>>, %arg2: memref<2x128xf32, #tpu.memory_space<vmem>>, %arg3: memref<512x128xbf16, #tpu.memory_space<vmem>>) attributes {dimension_semantics = [#tpu.dimension_semantics<parallel>], iteration_bounds = array<i64: 1>, scalar_prefetch = 0 : i64, scratch_operands = 0 : i64, tpu.core_type = #tpu.core_type<tc>, window_params = [{transform_indices = @transform_0, window_bounds = array<i64: 512, 128>}, {pipeline_mode = #tpu.pipeline_mode<synchronous>, transform_indices = @transform_1, window_bounds = array<i64: 2, 128>}, {transform_indices = @transform_2, window_bounds = array<i64: 512, 128>}]} {
    %c0 = arith.constant 0 : index
    %c0_0 = arith.constant 0 : index
    %0 = vector.load %arg1[%c0, %c0_0] : memref<512x128xbf16, #tpu.memory_space<vmem>>, vector<512x128xbf16>
    %1 = arith.extf %0 : vector<512x128xbf16> to vector<512x128xf32>
    %c0_1 = arith.constant 0 : index
    %c0_2 = arith.constant 0 : index
    %2 = vector.load %arg2[%c0_1, %c0_2] : memref<2x128xf32, #tpu.memory_space<vmem>>, vector<1x128xf32>
    %3 = vector.broadcast %2 : vector<1x128xf32> to vector<512x128xf32>
    %4 = arith.mulf %1, %3 : vector<512x128xf32>
    %c1 = arith.constant 1 : index
    %c0_3 = arith.constant 0 : index
    %5 = vector.load %arg2[%c1, %c0_3] : memref<2x128xf32, #tpu.memory_space<vmem>>, vector<1x128xf32>
    %6 = vector.broadcast %5 : vector<1x128xf32> to vector<512x128xf32>
    %7 = arith.addf %4, %6 : vector<512x128xf32>
    %cst = arith.constant 0.000000e+00 : f32
    %8 = vector.broadcast %cst : f32 to vector<512x128xf32>
    %9 = arith.maximumf %7, %8 : vector<512x128xf32>
    %10 = arith.truncf %9 : vector<512x128xf32> to vector<512x128xbf16>
    %c0_4 = arith.constant 0 : index
    %c0_5 = arith.constant 0 : index
    %11 = vector.load %arg3[%c0_4, %c0_5] : memref<512x128xbf16, #tpu.memory_space<vmem>>, vector<512x128xbf16>
    tpu.vector_store %arg3[%c0_4, %c0_5], %10 {strides = array<i32>} : memref<512x128xbf16, #tpu.memory_space<vmem>>, vector<512x128xbf16>,
    return
  }
  func.func @transform_0(%arg0: i32) -> (i32, i32) {
    %c0_i32 = arith.constant 0 : i32
    %c0_i32_0 = arith.constant 0 : i32
    return %arg0, %c0_i32 : i32, i32
  }
  func.func @transform_1(%arg0: i32) -> (i32, i32) {
    %c0_i32 = arith.constant 0 : i32
    %c0_i32_0 = arith.constant 0 : i32
    %c0_i32_1 = arith.constant 0 : i32
    return %c0_i32, %c0_i32_0 : i32, i32
  }
  func.func @transform_2(%arg0: i32) -> (i32, i32) {
    %c0_i32 = arith.constant 0 : i32
    %c0_i32_0 = arith.constant 0 : i32
    return %arg0, %c0_i32 : i32, i32
  }
}

module attributes {stable_mosaic.version = 11 : i64} {
  func.func @_bn_add_act_kernel(%arg0: i32, %arg1: memref<512x128xbf16, #tpu.memory_space<vmem>>, %arg2: memref<2x128xf32, #tpu.memory_space<vmem>>, %arg3: memref<512x128xbf16, #tpu.memory_space<vmem>>, %arg4: memref<512x128xf32, #tpu.memory_space<vmem>>) attributes {dimension_semantics = [#tpu.dimension_semantics<parallel>], iteration_bounds = array<i64: 1>, scalar_prefetch = 0 : i64, scratch_operands = 0 : i64, tpu.core_type = #tpu.core_type<tc>, window_params = [{transform_indices = @transform_0, window_bounds = array<i64: 512, 128>}, {pipeline_mode = #tpu.pipeline_mode<synchronous>, transform_indices = @transform_1, window_bounds = array<i64: 2, 128>}, {transform_indices = @transform_2, window_bounds = array<i64: 512, 128>}, {transform_indices = @transform_3, window_bounds = array<i64: 512, 128>}]} {
    %c0 = arith.constant 0 : index
    %c0_0 = arith.constant 0 : index
    %0 = vector.load %arg1[%c0, %c0_0] : memref<512x128xbf16, #tpu.memory_space<vmem>>, vector<512x128xbf16>
    %1 = arith.extf %0 : vector<512x128xbf16> to vector<512x128xf32>
    %c0_1 = arith.constant 0 : index
    %c0_2 = arith.constant 0 : index
    %2 = vector.load %arg2[%c0_1, %c0_2] : memref<2x128xf32, #tpu.memory_space<vmem>>, vector<1x128xf32>
    %3 = vector.broadcast %2 : vector<1x128xf32> to vector<512x128xf32>
    %4 = arith.mulf %1, %3 : vector<512x128xf32>
    %c1 = arith.constant 1 : index
    %c0_3 = arith.constant 0 : index
    %5 = vector.load %arg2[%c1, %c0_3] : memref<2x128xf32, #tpu.memory_space<vmem>>, vector<1x128xf32>
    %6 = vector.broadcast %5 : vector<1x128xf32> to vector<512x128xf32>
    %7 = arith.addf %4, %6 : vector<512x128xf32>
    %c0_4 = arith.constant 0 : index
    %c0_5 = arith.constant 0 : index
    %8 = vector.load %arg3[%c0_4, %c0_5] : memref<512x128xbf16, #tpu.memory_space<vmem>>, vector<512x128xbf16>
    %9 = arith.extf %8 : vector<512x128xbf16> to vector<512x128xf32>
    %10 = arith.addf %7, %9 : vector<512x128xf32>
    %cst = arith.constant 0.000000e+00 : f32
    %11 = vector.broadcast %cst : f32 to vector<512x128xf32>
    %12 = arith.maximumf %10, %11 : vector<512x128xf32>
    %c0_6 = arith.constant 0 : index
    %c0_7 = arith.constant 0 : index
    %13 = vector.load %arg4[%c0_6, %c0_7] : memref<512x128xf32, #tpu.memory_space<vmem>>, vector<512x128xf32>
    tpu.vector_store %arg4[%c0_6, %c0_7], %12 {strides = array<i32>} : memref<512x128xf32, #tpu.memory_space<vmem>>, vector<512x128xf32>,
    return
  }
  func.func @transform_0(%arg0: i32) -> (i32, i32) {
    %c0_i32 = arith.constant 0 : i32
    %c0_i32_0 = arith.constant 0 : i32
    return %arg0, %c0_i32 : i32, i32
  }
  func.func @transform_1(%arg0: i32) -> (i32, i32) {
    %c0_i32 = arith.constant 0 : i32
    %c0_i32_0 = arith.constant 0 : i32
    %c0_i32_1 = arith.constant 0 : i32
    return %c0_i32, %c0_i32_0 : i32, i32
  }
  func.func @transform_2(%arg0: i32) -> (i32, i32) {
    %c0_i32 = arith.constant 0 : i32
    %c0_i32_0 = arith.constant 0 : i32
    return %arg0, %c0_i32 : i32, i32
  }
  func.func @transform_3(%arg0: i32) -> (i32, i32) {
    %c0_i32 = arith.constant 0 : i32
    %c0_i32_0 = arith.constant 0 : i32
    return %arg0, %c0_i32 : i32, i32
  }
}

</mosaic_0001>

<bundles_post_ra>
// kernel: _lambda_.5
= control target key start
LH: loop header
LB: loop body
LE: loop exit
PB: predicated region body
PF: predicated region fallthrough
CT: control target
= control target key end

     0   :  { %s1490_s0 = inlined_call_operand.vmem [shape: bf16[512,128], index: 0, kind: input, shape index: {}]   ;;  %s1491_s1 = inlined_call_operand.vmem [shape: f32[2,128], index: 1, kind: input, shape index: {}]   ;;  %s1492_s2 = inlined_call_operand.vmem [shape: bf16[512,128], index: 2, kind: output, shape index: {}]  }
   0x1   :  { %v796_v0 = vld [vmem:[%s1490_s0] sm:$0xff]   ;;  %v1083_v4 = vld [vmem:[%s1490_s0 + $0x8] sm:$0xff]   ;;  %v1084_v5 = vld [vmem:[%s1490_s0 + $0x10] sm:$0xff]  }
   0x2   :  { %v1166_v1 = vld [vmem:[%s1491_s1] ss:$0 sm:$0xff]  ;;  %v797_v2 = vunpack.c.l.bf16 %v796_v0  ;;  %v798_v3 = vunpack.c.h.bf16 %v796_v0  ;;  %v1085_v6 = vld [vmem:[%s1490_s0 + $0x18] sm:$0xff]   ;;  %v1180_v7 = vld [vmem:[%s1491_s1 + $0x1] ss:$0 sm:$0xff]  ;;  %v801_v8 = vunpack.c.l.bf16 %v1083_v4  ;;  %v802_v9 = vunpack.c.h.bf16 %v1083_v4 }
   0x3   :  { %v805_v10 = vunpack.c.l.bf16 %v1084_v5  ;;  %v806_v11 = vunpack.c.h.bf16 %v1084_v5  ;;  %v809_v14 = vunpack.c.l.bf16 %v1085_v6  ;;  %v810_v15 = vunpack.c.h.bf16 %v1085_v6  ;;  %v1086_v28 = vld [vmem:[%s1490_s0 + $0x20] sm:$0xff]   ;;  %v1087_v33 = vld [vmem:[%s1490_s0 + $0x28] sm:$0xff]   ;;  %v1088_v38 = vld [vmem:[%s1490_s0 + $0x30] sm:$0xff]  }
   0x4   :  { %v144_v12 = vmul.f32 %v797_v2, %v1166_v1  ;;  %v145_v13 = vmul.f32 %v798_v3, %v1166_v1  ;;  %v146_v16 = vmul.f32 %v801_v8, %v1166_v1  ;;  %v147_v17 = vmul.f32 %v802_v9, %v1166_v1  ;;  %v1089_v43 = vld [vmem:[%s1490_s0 + $0x38] sm:$0xff]   ;;  %v1090_v0 = vld [vmem:[%s1490_s0 + $0x40] sm:$0xff]  }
   0x5   :  { %v148_v18 = vmul.f32 %v805_v10, %v1166_v1  ;;  %v149_v19 = vmul.f32 %v806_v11, %v1166_v1  ;;  %v150_v22 = vmul.f32 %v809_v14, %v1166_v1  ;;  %v151_v23 = vmul.f32 %v810_v15, %v1166_v1  ;;  %v1091_v11 = vld [vmem:[%s1490_s0 + $0x48] sm:$0xff]  }
   0x6   :  { %v213_v20 = vadd.f32 %v1180_v7, %v144_v12  ;;  %v214_v21 = vadd.f32 %v1180_v7, %v145_v13  ;;  %v215_v24 = vadd.f32 %v1180_v7, %v146_v16  ;;  %v216_v25 = vadd.f32 %v1180_v7, %v147_v17  ;;  %v1092_v16 = vld [vmem:[%s1490_s0 + $0x50] sm:$0xff]  }
   0x7   :  { %v217_v26 = vadd.f32 %v1180_v7, %v148_v18  ;;  %v218_v27 = vadd.f32 %v1180_v7, %v149_v19  ;;  %v219_v31 = vadd.f32 %v1180_v7, %v150_v22  ;;  %v220_v32 = vadd.f32 %v1180_v7, %v151_v23 }
   0x8   :  { %v277_v29 = vmax.f32 %v213_v20, 0.0  ;;  %v278_v30 = vmax.f32 %v214_v21, 0.0  ;;  %v279_v34 = vmax.f32 %v215_v24, 0.0  ;;  %v280_v35 = vmax.f32 %v216_v25, 0.0  ;;  %v1093_v25 = vld [vmem:[%s1490_s0 + $0x58] sm:$0xff]  }
   0x9   :  { %v281_v36 = vmax.f32 %v217_v26, 0.0  ;;  %v282_v37 = vmax.f32 %v218_v27, 0.0  ;;  %v283_v40 = vmax.f32 %v219_v31, 0.0  ;;  %v284_v41 = vmax.f32 %v220_v32, 0.0 }
   0xa   :  { %v926_v39 = vpack.c.bf16 %v278_v30, %v277_v29  ;;  %v813_v42 = vunpack.c.l.bf16 %v1086_v28  ;;  %v931_v44 = vpack.c.bf16 %v280_v35, %v279_v34  ;;  %v814_v46 = vunpack.c.h.bf16 %v1086_v28 }
   0xb   :  { %v936_v45 = vpack.c.bf16 %v282_v37, %v281_v36  ;;  %v817_v47 = vunpack.c.l.bf16 %v1087_v33  ;;  %v941_v48 = vpack.c.bf16 %v284_v41, %v283_v40  ;;  %v818_v50 = vunpack.c.h.bf16 %v1087_v33 }
   0xc   :  { %927 = vst [vmem:[%s1492_s2] sm:$0xff] %v926_v39   ;;  %v152_v49 = vmul.f32 %v813_v42, %v1166_v1  ;;  %v821_v51 = vunpack.c.l.bf16 %v1088_v38  ;;  %1114 = vst [vmem:[%s1492_s2 + $0x8] sm:$0xff] %v931_v44   ;;  %v153_v52 = vmul.f32 %v814_v46, %v1166_v1  ;;  %v822_v54 = vunpack.c.h.bf16 %v1088_v38  ;;  %v1094_v38 = vld [vmem:[%s1490_s0 + $0x60] sm:$0xff]  }
   0xd   :  { %1115 = vst [vmem:[%s1492_s2 + $0x10] sm:$0xff] %v936_v45   ;;  %v154_v53 = vmul.f32 %v817_v47, %v1166_v1  ;;  %v825_v55 = vunpack.c.l.bf16 %v1089_v43  ;;  %1116 = vst [vmem:[%s1492_s2 + $0x18] sm:$0xff] %v941_v48   ;;  %v155_v57 = vmul.f32 %v818_v50, %v1166_v1  ;;  %v826_v59 = vunpack.c.h.bf16 %v1089_v43 }
   0xe   :  { %v221_v56 = vadd.f32 %v1180_v7, %v152_v49  ;;  %v156_v58 = vmul.f32 %v821_v51, %v1166_v1  ;;  %v222_v60 = vadd.f32 %v1180_v7, %v153_v52  ;;  %v157_v62 = vmul.f32 %v822_v54, %v1166_v1  ;;  %v1095_v51 = vld [vmem:[%s1490_s0 + $0x68] sm:$0xff]  }
   0xf   :  { %v223_v61 = vadd.f32 %v1180_v7, %v154_v53  ;;  %v158_v63 = vmul.f32 %v825_v55, %v1166_v1  ;;  %v224_v3 = vadd.f32 %v1180_v7, %v155_v57  ;;  %v159_v5 = vmul.f32 %v826_v59, %v1166_v1 }
  0x10   :  { %v285_v2 = vmax.f32 %v221_v56, 0.0  ;;  %v225_v4 = vadd.f32 %v1180_v7, %v156_v58  ;;  %v286_v6 = vmax.f32 %v222_v60, 0.0  ;;  %v226_v9 = vadd.f32 %v1180_v7, %v157_v62  ;;  %v1096_v60 = vld [vmem:[%s1490_s0 + $0x70] sm:$0xff]  }
  0x11   :  { %v287_v8 = vmax.f32 %v223_v61, 0.0  ;;  %v227_v10 = vadd.f32 %v1180_v7, %v158_v63  ;;  %v288_v12 = vmax.f32 %v224_v3, 0.0  ;;  %v228_v14 = vadd.f32 %v1180_v7, %v159_v5 }
  0x12   :  { %v289_v13 = vmax.f32 %v225_v4, 0.0  ;;  %v829_v15 = vunpack.c.l.bf16 %v1090_v0  ;;  %v946_v17 = vpack.c.bf16 %v286_v6, %v285_v2  ;;  %v290_v18 = vmax.f32 %v226_v9, 0.0  ;;  %v1097_v2 = vld [vmem:[%s1490_s0 + $0x78] sm:$0xff]  }
  0x13   :  { %v291_v19 = vmax.f32 %v227_v10, 0.0  ;;  %v830_v20 = vunpack.c.h.bf16 %v1090_v0  ;;  %v951_v21 = vpack.c.bf16 %v288_v12, %v287_v8  ;;  %v292_v22 = vmax.f32 %v228_v14, 0.0  ;;  %v1098_v12 = vld [vmem:[%s1490_s0 + $0x80] sm:$0xff]  }
  0x14   :  { %v160_v23 = vmul.f32 %v829_v15, %v1166_v1  ;;  %v833_v24 = vunpack.c.l.bf16 %v1091_v11  ;;  %1117 = vst [vmem:[%s1492_s2 + $0x20] sm:$0xff] %v946_v17   ;;  %v956_v26 = vpack.c.bf16 %v290_v18, %v289_v13  ;;  %v834_v28 = vunpack.c.h.bf16 %v1091_v11 }
  0x15   :  { %v161_v27 = vmul.f32 %v830_v20, %v1166_v1  ;;  %v837_v29 = vunpack.c.l.bf16 %v1092_v16  ;;  %1118 = vst [vmem:[%s1492_s2 + $0x28] sm:$0xff] %v951_v21   ;;  %v961_v30 = vpack.c.bf16 %v292_v22, %v291_v19  ;;  %v838_v33 = vunpack.c.h.bf16 %v1092_v16 }
  0x16   :  { %v229_v31 = vadd.f32 %v1180_v7, %v160_v23  ;;  %v162_v32 = vmul.f32 %v833_v24, %v1166_v1  ;;  %1119 = vst [vmem:[%s1492_s2 + $0x30] sm:$0xff] %v956_v26   ;;  %v163_v35 = vmul.f32 %v834_v28, %v1166_v1  ;;  %v841_v37 = vunpack.c.l.bf16 %v1093_v25 }
  0x17   :  { %v230_v34 = vadd.f32 %v1180_v7, %v161_v27  ;;  %v164_v36 = vmul.f32 %v837_v29, %v1166_v1  ;;  %1120 = vst [vmem:[%s1492_s2 + $0x38] sm:$0xff] %v961_v30   ;;  %v165_v41 = vmul.f32 %v838_v33, %v1166_v1  ;;  %v842_v42 = vunpack.c.h.bf16 %v1093_v25  ;;  %v1099_v29 = vld [vmem:[%s1490_s0 + $0x88] sm:$0xff]  }
  0x18   :  { %v293_v39 = vmax.f32 %v229_v31, 0.0  ;;  %v231_v40 = vadd.f32 %v1180_v7, %v162_v32  ;;  %v232_v44 = vadd.f32 %v1180_v7, %v163_v35  ;;  %v166_v46 = vmul.f32 %v841_v37, %v1166_v1 }
  0x19   :  { %v294_v43 = vmax.f32 %v230_v34, 0.0  ;;  %v233_v45 = vadd.f32 %v1180_v7, %v164_v36  ;;  %v234_v48 = vadd.f32 %v1180_v7, %v165_v41  ;;  %v167_v49 = vmul.f32 %v842_v42, %v1166_v1  ;;  %v1100_v34 = vld [vmem:[%s1490_s0 + $0x90] sm:$0xff]  }
  0x1a   :  { %v295_v47 = vmax.f32 %v231_v40, 0.0  ;;  %v845_v50 = vunpack.c.l.bf16 %v1094_v38  ;;  %v296_v53 = vmax.f32 %v232_v44, 0.0  ;;  %v235_v55 = vadd.f32 %v1180_v7, %v166_v46 }
  0x1b   :  { %v966_v52 = vpack.c.bf16 %v294_v43, %v293_v39  ;;  %v297_v54 = vmax.f32 %v233_v45, 0.0  ;;  %v298_v56 = vmax.f32 %v234_v48, 0.0  ;;  %v236_v57 = vadd.f32 %v1180_v7, %v167_v49  ;;  %v1101_v43 = vld [vmem:[%s1490_s0 + $0x98] sm:$0xff]  }
  0x1c   :  { %v846_v58 = vunpack.c.h.bf16 %v1094_v38  ;;  %v168_v59 = vmul.f32 %v845_v50, %v1166_v1  ;;  %v971_v61 = vpack.c.bf16 %v296_v53, %v295_v47  ;;  %v299_v62 = vmax.f32 %v235_v55, 0.0 }
  0x1d   :  { %1121 = vst [vmem:[%s1492_s2 + $0x40] sm:$0xff] %v966_v52   ;;  %v849_v63 = vunpack.c.l.bf16 %v1095_v51  ;;  %v850_v0 = vunpack.c.h.bf16 %v1095_v51  ;;  %v976_v3 = vpack.c.bf16 %v298_v56, %v297_v54  ;;  %v300_v4 = vmax.f32 %v236_v57, 0.0  ;;  %v1102_v56 = vld [vmem:[%s1490_s0 + $0xa0] sm:$0xff]  }
  0x1e   :  { %v169_v5 = vmul.f32 %v846_v58, %v1166_v1  ;;  %v237_v6 = vadd.f32 %v1180_v7, %v168_v59  ;;  %1122 = vst [vmem:[%s1492_s2 + $0x48] sm:$0xff] %v971_v61   ;;  %v853_v10 = vunpack.c.l.bf16 %v1096_v60  ;;  %v854_v11 = vunpack.c.h.bf16 %v1096_v60 }
  0x1f   :  { %v170_v8 = vmul.f32 %v849_v63, %v1166_v1  ;;  %v171_v9 = vmul.f32 %v850_v0, %v1166_v1  ;;  %1123 = vst [vmem:[%s1492_s2 + $0x50] sm:$0xff] %v976_v3   ;;  %v981_v13 = vpack.c.bf16 %v300_v4, %v299_v62  ;;  %v857_v16 = vunpack.c.l.bf16 %v1097_v2 }
  0x20   :  { %v238_v14 = vadd.f32 %v1180_v7, %v169_v5  ;;  %v301_v15 = vmax.f32 %v237_v6, 0.0  ;;  %v172_v19 = vmul.f32 %v853_v10, %v1166_v1  ;;  %v173_v20 = vmul.f32 %v854_v11, %v1166_v1 }
  0x21   :  { %v239_v17 = vadd.f32 %v1180_v7, %v170_v8  ;;  %v240_v18 = vadd.f32 %v1180_v7, %v171_v9  ;;  %1124 = vst [vmem:[%s1492_s2 + $0x58] sm:$0xff] %v981_v13   ;;  %v858_v22 = vunpack.c.h.bf16 %v1097_v2  ;;  %v174_v23 = vmul.f32 %v857_v16, %v1166_v1  ;;  %v1103_v2 = vld [vmem:[%s1490_s0 + $0xa8] sm:$0xff]   ;;  %v1104_v16 = vld [vmem:[%s1490_s0 + $0xb0] sm:$0xff]  }
  0x22   :  { %v302_v21 = vmax.f32 %v238_v14, 0.0  ;;  %v861_v24 = vunpack.c.l.bf16 %v1098_v12  ;;  %v241_v27 = vadd.f32 %v1180_v7, %v172_v19  ;;  %v242_v28 = vadd.f32 %v1180_v7, %v173_v20 }
  0x23   :  { %v303_v25 = vmax.f32 %v239_v17, 0.0  ;;  %v304_v26 = vmax.f32 %v240_v18, 0.0  ;;  %v175_v31 = vmul.f32 %v858_v22, %v1166_v1  ;;  %v243_v32 = vadd.f32 %v1180_v7, %v174_v23 }
  0x24   :  { %v986_v30 = vpack.c.bf16 %v302_v21, %v301_v15  ;;  %v862_v33 = vunpack.c.h.bf16 %v1098_v12  ;;  %v305_v36 = vmax.f32 %v241_v27, 0.0  ;;  %v306_v37 = vmax.f32 %v242_v28, 0.0  ;;  %v1105_v21 = vld [vmem:[%s1490_s0 + $0xb8] sm:$0xff]  }
  0x25   :  { %v991_v35 = vpack.c.bf16 %v304_v26, %v303_v25  ;;  %v176_v38 = vmul.f32 %v861_v24, %v1166_v1  ;;  %v244_v39 = vadd.f32 %v1180_v7, %v175_v31  ;;  %v307_v40 = vmax.f32 %v243_v32, 0.0 }
  0x26   :  { %1125 = vst [vmem:[%s1492_s2 + $0x60] sm:$0xff] %v986_v30   ;;  %v177_v41 = vmul.f32 %v862_v33, %v1166_v1  ;;  %v865_v42 = vunpack.c.l.bf16 %v1099_v29  ;;  %v996_v44 = vpack.c.bf16 %v306_v37, %v305_v36  ;;  %v866_v46 = vunpack.c.h.bf16 %v1099_v29 }
  0x27   :  { %1126 = vst [vmem:[%s1492_s2 + $0x68] sm:$0xff] %v991_v35   ;;  %v245_v45 = vadd.f32 %v1180_v7, %v176_v38  ;;  %v869_v47 = vunpack.c.l.bf16 %v1100_v34  ;;  %v308_v48 = vmax.f32 %v244_v39, 0.0  ;;  %v870_v51 = vunpack.c.h.bf16 %v1100_v34  ;;  %v1106_v34 = vld [vmem:[%s1490_s0 + $0xc0] sm:$0xff]  }
  0x28   :  { %v246_v49 = vadd.f32 %v1180_v7, %v177_v41  ;;  %v178_v50 = vmul.f32 %v865_v42, %v1166_v1  ;;  %1127 = vst [vmem:[%s1492_s2 + $0x70] sm:$0xff] %v996_v44   ;;  %v179_v53 = vmul.f32 %v866_v46, %v1166_v1  ;;  %v873_v55 = vunpack.c.l.bf16 %v1101_v43 }
  0x29   :  { %v309_v52 = vmax.f32 %v245_v45, 0.0  ;;  %v180_v54 = vmul.f32 %v869_v47, %v1166_v1  ;;  %v1001_v57 = vpack.c.bf16 %v308_v48, %v307_v40  ;;  %v181_v60 = vmul.f32 %v870_v51, %v1166_v1  ;;  %v1107_v47 = vld [vmem:[%s1490_s0 + $0xc8] sm:$0xff]  }
  0x2a   :  { %v310_v58 = vmax.f32 %v246_v49, 0.0  ;;  %v247_v59 = vadd.f32 %v1180_v7, %v178_v50  ;;  %v248_v61 = vadd.f32 %v1180_v7, %v179_v53  ;;  %v874_v63 = vunpack.c.h.bf16 %v1101_v43 }
  0x2b   :  { %v249_v62 = vadd.f32 %v1180_v7, %v180_v54  ;;  %v182_v0 = vmul.f32 %v873_v55, %v1166_v1  ;;  %1128 = vst [vmem:[%s1492_s2 + $0x78] sm:$0xff] %v1001_v57   ;;  %v250_v5 = vadd.f32 %v1180_v7, %v181_v60  ;;  %v877_v6 = vunpack.c.l.bf16 %v1102_v56 }
  0x2c   :  { %v1006_v3 = vpack.c.bf16 %v310_v58, %v309_v52  ;;  %v311_v4 = vmax.f32 %v247_v59, 0.0  ;;  %v312_v8 = vmax.f32 %v248_v61, 0.0  ;;  %v183_v10 = vmul.f32 %v874_v63, %v1166_v1  ;;  %v1108_v52 = vld [vmem:[%s1490_s0 + $0xd0] sm:$0xff]   ;;  %v1109_v61 = vld [vmem:[%s1490_s0 + $0xd8] sm:$0xff]  }
  0x2d   :  { %v313_v9 = vmax.f32 %v249_v62, 0.0  ;;  %v251_v11 = vadd.f32 %v1180_v7, %v182_v0  ;;  %v314_v12 = vmax.f32 %v250_v5, 0.0  ;;  %v878_v13 = vunpack.c.h.bf16 %v1102_v56 }
  0x2e   :  { %1129 = vst [vmem:[%s1492_s2 + $0x80] sm:$0xff] %v1006_v3   ;;  %v184_v14 = vmul.f32 %v877_v6, %v1166_v1  ;;  %v881_v15 = vunpack.c.l.bf16 %v1103_v2  ;;  %v1011_v17 = vpack.c.bf16 %v312_v8, %v311_v4  ;;  %v252_v18 = vadd.f32 %v1180_v7, %v183_v10 }
  0x2f   :  { %v315_v19 = vmax.f32 %v251_v11, 0.0  ;;  %v882_v20 = vunpack.c.h.bf16 %v1103_v2  ;;  %v1016_v22 = vpack.c.bf16 %v314_v12, %v313_v9  ;;  %v185_v23 = vmul.f32 %v878_v13, %v1166_v1  ;;  %v1110_v12 = vld [vmem:[%s1490_s0 + $0xe0] sm:$0xff]  }
  0x30   :  { %v253_v24 = vadd.f32 %v1180_v7, %v184_v14  ;;  %v186_v25 = vmul.f32 %v881_v15, %v1166_v1  ;;  %1130 = vst [vmem:[%s1492_s2 + $0x88] sm:$0xff] %v1011_v17   ;;  %v316_v26 = vmax.f32 %v252_v18, 0.0  ;;  %v885_v28 = vunpack.c.l.bf16 %v1104_v16 }
  0x31   :  { %v187_v27 = vmul.f32 %v882_v20, %v1166_v1  ;;  %v886_v29 = vunpack.c.h.bf16 %v1104_v16  ;;  %1131 = vst [vmem:[%s1492_s2 + $0x90] sm:$0xff] %v1016_v22   ;;  %v254_v30 = vadd.f32 %v1180_v7, %v185_v23  ;;  %v889_v33 = vunpack.c.l.bf16 %v1105_v21 }
  0x32   :  { %v317_v31 = vmax.f32 %v253_v24, 0.0  ;;  %v255_v32 = vadd.f32 %v1180_v7, %v186_v25  ;;  %v1021_v35 = vpack.c.bf16 %v316_v26, %v315_v19  ;;  %v188_v37 = vmul.f32 %v885_v28, %v1166_v1 }
  0x33   :  { %v256_v36 = vadd.f32 %v1180_v7, %v187_v27  ;;  %v189_v38 = vmul.f32 %v886_v29, %v1166_v1  ;;  %v318_v39 = vmax.f32 %v254_v30, 0.0  ;;  %v890_v41 = vunpack.c.h.bf16 %v1105_v21  ;;  %v1111_v21 = vld [vmem:[%s1490_s0 + $0xe8] sm:$0xff]  }
  0x34   :  { %v319_v40 = vmax.f32 %v255_v32, 0.0  ;;  %v190_v42 = vmul.f32 %v889_v33, %v1166_v1  ;;  %1132 = vst [vmem:[%s1492_s2 + $0x98] sm:$0xff] %v1021_v35   ;;  %v257_v44 = vadd.f32 %v1180_v7, %v188_v37  ;;  %v893_v46 = vunpack.c.l.bf16 %v1106_v34 }
  0x35   :  { %v320_v43 = vmax.f32 %v256_v36, 0.0  ;;  %v258_v45 = vadd.f32 %v1180_v7, %v189_v38  ;;  %v1026_v48 = vpack.c.bf16 %v318_v39, %v317_v31  ;;  %v191_v49 = vmul.f32 %v890_v41, %v1166_v1  ;;  %v1113_v39 = vld [vmem:[%s1490_s0 + $0xf8] sm:$0xff]  }
  0x36   :  { %v259_v50 = vadd.f32 %v1180_v7, %v190_v42  ;;  %v894_v51 = vunpack.c.h.bf16 %v1106_v34  ;;  %v321_v54 = vmax.f32 %v257_v44, 0.0  ;;  %v192_v56 = vmul.f32 %v893_v46, %v1166_v1  ;;  %v1112_v34 = vld [vmem:[%s1490_s0 + $0xf0] sm:$0xff]  }
  0x37   :  { %v1031_v53 = vpack.c.bf16 %v320_v43, %v319_v40  ;;  %v322_v55 = vmax.f32 %v258_v45, 0.0  ;;  %1133 = vst [vmem:[%s1492_s2 + $0xa0] sm:$0xff] %v1026_v48   ;;  %v260_v57 = vadd.f32 %v1180_v7, %v191_v49  ;;  %v897_v60 = vunpack.c.l.bf16 %v1107_v47 }
  0x38   :  { %v323_v58 = vmax.f32 %v259_v50, 0.0  ;;  %v193_v59 = vmul.f32 %v894_v51, %v1166_v1  ;;  %v261_v63 = vadd.f32 %v1180_v7, %v192_v56  ;;  %v898_v0 = vunpack.c.h.bf16 %v1107_v47 }
  0x39   :  { %1134 = vst [vmem:[%s1492_s2 + $0xa8] sm:$0xff] %v1031_v53   ;;  %v1036_v62 = vpack.c.bf16 %v322_v55, %v321_v54  ;;  %v901_v2 = vunpack.c.l.bf16 %v1108_v52  ;;  %v324_v3 = vmax.f32 %v260_v57, 0.0  ;;  %v194_v5 = vmul.f32 %v897_v60, %v1166_v1 }
  0x3a   :  { %v262_v4 = vadd.f32 %v1180_v7, %v193_v59  ;;  %v902_v6 = vunpack.c.h.bf16 %v1108_v52  ;;  %v325_v8 = vmax.f32 %v261_v63, 0.0  ;;  %v195_v9 = vmul.f32 %v898_v0, %v1166_v1 }
  0x3b   :  { %1135 = vst [vmem:[%s1492_s2 + $0xb0] sm:$0xff] %v1036_v62   ;;  %v196_v10 = vmul.f32 %v901_v2, %v1166_v1  ;;  %v905_v11 = vunpack.c.l.bf16 %v1109_v61  ;;  %v1041_v13 = vpack.c.bf16 %v324_v3, %v323_v58  ;;  %v263_v15 = vadd.f32 %v1180_v7, %v194_v5 }
  0x3c   :  { %v326_v14 = vmax.f32 %v262_v4, 0.0  ;;  %v197_v16 = vmul.f32 %v902_v6, %v1166_v1  ;;  %v264_v17 = vadd.f32 %v1180_v7, %v195_v9  ;;  %v906_v19 = vunpack.c.h.bf16 %v1109_v61 }
  0x3d   :  { %v265_v18 = vadd.f32 %v1180_v7, %v196_v10  ;;  %v198_v20 = vmul.f32 %v905_v11, %v1166_v1  ;;  %1136 = vst [vmem:[%s1492_s2 + $0xb8] sm:$0xff] %v1041_v13   ;;  %v327_v23 = vmax.f32 %v263_v15, 0.0  ;;  %v909_v25 = vunpack.c.l.bf16 %v1110_v12 }
  0x3e   :  { %v1046_v22 = vpack.c.bf16 %v326_v14, %v325_v8  ;;  %v266_v24 = vadd.f32 %v1180_v7, %v197_v16  ;;  %v328_v26 = vmax.f32 %v264_v17, 0.0  ;;  %v199_v28 = vmul.f32 %v906_v19, %v1166_v1 }
  0x3f   :  { %v329_v27 = vmax.f32 %v265_v18, 0.0  ;;  %v267_v29 = vadd.f32 %v1180_v7, %v198_v20  ;;  %v910_v31 = vunpack.c.h.bf16 %v1110_v12  ;;  %v200_v32 = vmul.f32 %v909_v25, %v1166_v1 }
  0x40   :  { %1137 = vst [vmem:[%s1492_s2 + $0xc0] sm:$0xff] %v1046_v22   ;;  %v330_v30 = vmax.f32 %v266_v24, 0.0  ;;  %v913_v33 = vunpack.c.l.bf16 %v1111_v21  ;;  %v1051_v35 = vpack.c.bf16 %v328_v26, %v327_v23  ;;  %v268_v36 = vadd.f32 %v1180_v7, %v199_v28 }
  0x41   :  { %v331_v37 = vmax.f32 %v267_v29, 0.0  ;;  %v914_v38 = vunpack.c.h.bf16 %v1111_v21  ;;  %v201_v41 = vmul.f32 %v910_v31, %v1166_v1  ;;  %v269_v42 = vadd.f32 %v1180_v7, %v200_v32 }
  0x42   :  { %v1056_v40 = vpack.c.bf16 %v330_v30, %v329_v27  ;;  %v202_v43 = vmul.f32 %v913_v33, %v1166_v1  ;;  %1138 = vst [vmem:[%s1492_s2 + $0xc8] sm:$0xff] %v1051_v35   ;;  %v332_v44 = vmax.f32 %v268_v36, 0.0  ;;  %v917_v46 = vunpack.c.l.bf16 %v1112_v34 }
  0x43   :  { %v203_v45 = vmul.f32 %v914_v38, %v1166_v1  ;;  %v918_v47 = vunpack.c.h.bf16 %v1112_v34  ;;  %v270_v48 = vadd.f32 %v1180_v7, %v201_v41  ;;  %v333_v49 = vmax.f32 %v269_v42, 0.0 }
  0x44   :  { %1139 = vst [vmem:[%s1492_s2 + $0xd0] sm:$0xff] %v1056_v40   ;;  %v271_v50 = vadd.f32 %v1180_v7, %v202_v43  ;;  %v921_v51 = vunpack.c.l.bf16 %v1113_v39  ;;  %v1061_v52 = vpack.c.bf16 %v332_v44, %v331_v37  ;;  %v204_v54 = vmul.f32 %v917_v46, %v1166_v1 }
  0x45   :  { %v272_v53 = vadd.f32 %v1180_v7, %v203_v45  ;;  %v205_v55 = vmul.f32 %v918_v47, %v1166_v1  ;;  %v334_v56 = vmax.f32 %v270_v48, 0.0  ;;  %v922_v58 = vunpack.c.h.bf16 %v1113_v39 }
  0x46   :  { %v335_v57 = vmax.f32 %v271_v50, 0.0  ;;  %v206_v59 = vmul.f32 %v921_v51, %v1166_v1  ;;  %1140 = vst [vmem:[%s1492_s2 + $0xd8] sm:$0xff] %v1061_v52   ;;  %v273_v61 = vadd.f32 %v1180_v7, %v204_v54 }
  0x47   :  { %v336_v60 = vmax.f32 %v272_v53, 0.0  ;;  %v274_v62 = vadd.f32 %v1180_v7, %v205_v55  ;;  %v1066_v63 = vpack.c.bf16 %v334_v56, %v333_v49  ;;  %v207_v0 = vmul.f32 %v922_v58, %v1166_v1 }
  0x48   :  { %v275_v2 = vadd.f32 %v1180_v7, %v206_v59  ;;  %v337_v4 = vmax.f32 %v273_v61, 0.0 }
  0x49   :  { %v1071_v3 = vpack.c.bf16 %v336_v60, %v335_v57  ;;  %v338_v5 = vmax.f32 %v274_v62, 0.0  ;;  %1141 = vst [vmem:[%s1492_s2 + $0xe0] sm:$0xff] %v1066_v63   ;;  %v276_v6 = vadd.f32 %v1180_v7, %v207_v0 }
  0x4a   :  { %v339_v8 = vmax.f32 %v275_v2, 0.0 }
  0x4b   :  { %1142 = vst [vmem:[%s1492_s2 + $0xe8] sm:$0xff] %v1071_v3   ;;  %v1076_v9 = vpack.c.bf16 %v338_v5, %v337_v4  ;;  %v340_v10 = vmax.f32 %v276_v6, 0.0 }
  0x4d   :  { %1143 = vst [vmem:[%s1492_s2 + $0xf0] sm:$0xff] %v1076_v9   ;;  %v1081_v1 = vpack.c.bf16 %v340_v10, %v339_v8 }
  0x4f   :  { %1144 = vst [vmem:[%s1492_s2 + $0xf8] sm:$0xff] %v1081_v1  }

// kernel: _lambda_.4
= control target key start
LH: loop header
LB: loop body
LE: loop exit
PB: predicated region body
PF: predicated region fallthrough
CT: control target
= control target key end

     0   :  { %v1827_v40 = vmov 0.0   ;;  %vm1250_vm0 = vcmask 1040384   ;;  %s2153_s1 = inlined_call_operand.vmem [shape: bf16[128,128], index: 1, kind: input, shape index: {}]   ;;  %s2154_s0 = inlined_call_operand.vmem [shape: bf16[512,128], index: 0, kind: input, shape index: {}]   ;;  %s2155_s3 = inlined_call_operand.vmem [shape: f32[1,2,128], index: 3, kind: output, shape index: {1}]   ;;  %s2156_s2 = inlined_call_operand.vmem [shape: bf16[512,128], index: 2, kind: output, shape index: {0}]  }
   0x1   :  { %v1787_v0 = vld [vmem:[%s2153_s1] sm:$0xff]   ;;  %v1788_v1 = vld [vmem:[%s2153_s1 + $0x8] sm:$0xff]   ;;  %v1789_v2 = vld [vmem:[%s2153_s1 + $0x10] sm:$0xff]   ;;  %54 = vst [vmem:[%s2155_s3] sm:$0x3] %v1827_v40 }
   0x2   :  { %1690 = vmatprep.subr.bf16.mxu0 %v1787_v0  ;;  %1770 = vmatprep.subr.bf16.mxu1 %v1787_v0  ;;  %v1790_v3 = vld [vmem:[%s2153_s1 + $0x18] sm:$0xff]   ;;  %v1795_v4 = vld [vmem:[%s2154_s0] sm:$0xff]   ;;  %v1792_v6 = vld [vmem:[%s2153_s1 + $0x28] sm:$0xff]  }
   0x3   :  { %1691 = vmatpush3.bf16.msra.mxu0 %v1787_v0  ;;  %1778 = vmatpush3.bf16.msra.mxu1 %v1787_v0  ;;  %v1791_v5 = vld [vmem:[%s2153_s1 + $0x20] sm:$0xff]   ;;  %v1793_v7 = vld [vmem:[%s2153_s1 + $0x30] sm:$0xff]   ;;  %v1794_v8 = vld [vmem:[%s2153_s1 + $0x38] sm:$0xff]  }
   0x4   :  { %1692 = vmatprep.subr.bf16.mxu0 %v1788_v1  ;;  %1771 = vmatprep.subr.bf16.mxu1 %v1788_v1  ;;  %v1811_v9 = vld [vmem:[%s2154_s0 + $0x80] sm:$0xff]   ;;  %v1796_v10 = vld [vmem:[%s2154_s0 + $0x8] sm:$0xff]   ;;  %v1797_v11 = vld [vmem:[%s2154_s0 + $0x10] sm:$0xff]  }
   0x5   :  { %1706 = vmatprep.mubr.bf16.mxu0 %v1795_v4  ;;  %1738 = vmatprep.mubr.bf16.mxu1 %v1811_v9  ;;  %v1812_v12 = vld [vmem:[%s2154_s0 + $0x88] sm:$0xff]   ;;  %v1813_v13 = vld [vmem:[%s2154_s0 + $0x90] sm:$0xff]   ;;  %v1798_v14 = vld [vmem:[%s2154_s0 + $0x18] sm:$0xff]  }
   0x6   :  { %v1799_v15 = vld [vmem:[%s2154_s0 + $0x20] sm:$0xff]   ;;  %v1814_v16 = vld [vmem:[%s2154_s0 + $0x98] sm:$0xff]   ;;  %v1800_v18 = vld [vmem:[%s2154_s0 + $0x28] sm:$0xff]  }
   0x7   :  { %1693 = vmatpush3.bf16.msra.mxu0 %v1788_v1  ;;  %1779 = vmatpush3.bf16.msra.mxu1 %v1788_v1  ;;  %v1815_v17 = vld [vmem:[%s2154_s0 + $0xa0] sm:$0xff]   ;;  %v1816_v19 = vld [vmem:[%s2154_s0 + $0xa8] sm:$0xff]   ;;  %v1801_v20 = vld [vmem:[%s2154_s0 + $0x30] sm:$0xff]  }
   0x8   :  { %1694 = vmatprep.subr.bf16.mxu0 %v1789_v2  ;;  %1772 = vmatprep.subr.bf16.mxu1 %v1789_v2  ;;  %v1817_v21 = vld [vmem:[%s2154_s0 + $0xb0] sm:$0xff]   ;;  %v1802_v22 = vld [vmem:[%s2154_s0 + $0x38] sm:$0xff]   ;;  %v1803_v24 = vld [vmem:[%s2154_s0 + $0x40] sm:$0xff]  }
   0x9   :  { %v1818_v23 = vld [vmem:[%s2154_s0 + $0xb8] sm:$0xff]   ;;  %v1819_v25 = vld [vmem:[%s2154_s0 + $0xc0] sm:$0xff]   ;;  %v1804_v26 = vld [vmem:[%s2154_s0 + $0x48] sm:$0xff]  }
   0xa   :  { %v1820_v27 = vld [vmem:[%s2154_s0 + $0xc8] sm:$0xff]   ;;  %v1805_v28 = vld [vmem:[%s2154_s0 + $0x50] sm:$0xff]   ;;  %v1806_v30 = vld [vmem:[%s2154_s0 + $0x58] sm:$0xff]  }
   0xb   :  { %1695 = vmatpush3.bf16.msra.mxu0 %v1789_v2  ;;  %1780 = vmatpush3.bf16.msra.mxu1 %v1789_v2  ;;  %v1821_v29 = vld [vmem:[%s2154_s0 + $0xd0] sm:$0xff]   ;;  %v1822_v31 = vld [vmem:[%s2154_s0 + $0xd8] sm:$0xff]   ;;  %v1807_v32 = vld [vmem:[%s2154_s0 + $0x60] sm:$0xff]  }
   0xc   :  { %1696 = vmatprep.subr.bf16.mxu0 %v1790_v3  ;;  %1773 = vmatprep.subr.bf16.mxu1 %v1790_v3  ;;  %v1823_v33 = vld [vmem:[%s2154_s0 + $0xe0] sm:$0xff]   ;;  %v1808_v34 = vld [vmem:[%s2154_s0 + $0x68] sm:$0xff]   ;;  %v1809_v36 = vld [vmem:[%s2154_s0 + $0x70] sm:$0xff]  }
   0xd   :  { %v1824_v35 = vld [vmem:[%s2154_s0 + $0xe8] sm:$0xff]   ;;  %v1825_v37 = vld [vmem:[%s2154_s0 + $0xf0] sm:$0xff]   ;;  %v1810_v38 = vld [vmem:[%s2154_s0 + $0x78] sm:$0xff]  }
   0xe   :  { %v1826_v39 = vld [vmem:[%s2154_s0 + $0xf8] sm:$0xff]  }
   0xf   :  { %1697 = vmatpush3.bf16.msra.mxu0 %v1790_v3  ;;  %1781 = vmatpush3.bf16.msra.mxu1 %v1790_v3 }
  0x10   :  { %1698 = vmatprep.subr.bf16.mxu0 %v1791_v5  ;;  %1774 = vmatprep.subr.bf16.mxu1 %v1791_v5 }
  0x13   :  { %1699 = vmatpush3.bf16.msra.mxu0 %v1791_v5  ;;  %1782 = vmatpush3.bf16.msra.mxu1 %v1791_v5 }
  0x14   :  { %1700 = vmatprep.subr.bf16.mxu0 %v1792_v6  ;;  %1775 = vmatprep.subr.bf16.mxu1 %v1792_v6 }
  0x17   :  { %1701 = vmatpush3.bf16.msra.mxu0 %v1792_v6  ;;  %1783 = vmatpush3.bf16.msra.mxu1 %v1792_v6 }
  0x18   :  { %1702 = vmatprep.subr.bf16.mxu0 %v1793_v7  ;;  %1776 = vmatprep.subr.bf16.mxu1 %v1793_v7 }
  0x1b   :  { %1703 = vmatpush3.bf16.msra.mxu0 %v1793_v7  ;;  %1784 = vmatpush3.bf16.msra.mxu1 %v1793_v7 }
  0x1c   :  { %1704 = vmatprep.subr.bf16.mxu0 %v1794_v8  ;;  %1777 = vmatprep.subr.bf16.mxu1 %v1794_v8 }
  0x1f   :  { %1705 = vmatpush3.bf16.msra.mxu0 %v1794_v8  ;;  %1785 = vmatpush3.bf16.msra.mxu1 %v1794_v8 }
  0x22   :  { %1707 = vmatmul.mubr.bf16.vlgmr.msra.gmra.mrb[0].mxu0 %v1796_v10  ;;  %1739 = vmatmul.mubr.bf16.vlgmr.msra.gmra.mrb[0].mxu1 %v1812_v12 }
  0x23   :  { %1710 = vmatprep.mubr.bf16.mxu0 %v1797_v11  ;;  %1742 = vmatprep.mubr.bf16.mxu1 %v1813_v13 }
  0x2a   :  { %1711 = vmatmul.mubr.bf16.gmra.mrb[4].mxu0 %v1798_v14  ;;  %1743 = vmatmul.mubr.bf16.gmra.mrb[4].mxu1 %v1814_v16 }
  0x2b   :  { %1714 = vmatprep.mubr.bf16.mxu0 %v1799_v15  ;;  %1746 = vmatprep.mubr.bf16.mxu1 %v1815_v17 }
  0x32   :  { %1715 = vmatmul.mubr.bf16.gmra.mrb[8].mxu0 %v1800_v18  ;;  %1747 = vmatmul.mubr.bf16.gmra.mrb[8].mxu1 %v1816_v19 }
  0x33   :  { %1718 = vmatprep.mubr.bf16.mxu0 %v1801_v20  ;;  %1750 = vmatprep.mubr.bf16.mxu1 %v1817_v21 }
  0x3a   :  { %1719 = vmatmul.mubr.bf16.gmra.mrb[12].mxu0 %v1802_v22  ;;  %1751 = vmatmul.mubr.bf16.gmra.mrb[12].mxu1 %v1818_v23 }
  0x3b   :  { %1722 = vmatprep.mubr.bf16.mxu0 %v1803_v24  ;;  %1754 = vmatprep.mubr.bf16.mxu1 %v1819_v25 }
  0x42   :  { %1723 = vmatmul.mubr.bf16.gmra.mrb[16].mxu0 %v1804_v26  ;;  %1755 = vmatmul.mubr.bf16.gmra.mrb[16].mxu1 %v1820_v27 }
  0x43   :  { %1726 = vmatprep.mubr.bf16.mxu0 %v1805_v28  ;;  %1758 = vmatprep.mubr.bf16.mxu1 %v1821_v29 }
  0x4a   :  { %1727 = vmatmul.mubr.bf16.gmra.mrb[20].mxu0 %v1806_v30  ;;  %1759 = vmatmul.mubr.bf16.gmra.mrb[20].mxu1 %v1822_v31 }
  0x4b   :  { %1730 = vmatprep.mubr.bf16.mxu0 %v1807_v32  ;;  %1762 = vmatprep.mubr.bf16.mxu1 %v1823_v33 }
  0x52   :  { %1731 = vmatmul.mubr.bf16.gmra.mrb[24].mxu0 %v1808_v34  ;;  %1763 = vmatmul.mubr.bf16.gmra.mrb[24].mxu1 %v1824_v35 }
  0x53   :  { %1734 = vmatprep.mubr.bf16.mxu0 %v1809_v36  ;;  %1766 = vmatprep.mubr.bf16.mxu1 %v1825_v37 }
  0x5a   :  { %1735 = vmatmul.mubr.bf16.gmra.mrb[28].mxu0 %v1810_v38  ;;  %1767 = vmatmul.mubr.bf16.gmra.mrb[28].mxu1 %v1826_v39 }
  0xf5   :  { %v1708_v41 = vpop.f32.mrb[0].mxu0  ;;  %v1740_v42 = vpop.f32.mrb[0].mxu1 }
  0xf6   :  { %v409_v43 = vpop.f32.mrb[1].mxu0  ;;  %v537_v44 = vpop.f32.mrb[1].mxu1 }
  0xf7   :  { %v1709_v45 = vpop.f32.mrb[2].mxu0  ;;  %v1741_v46 = vpop.f32.mrb[2].mxu1 }
  0xf8   :  { %v665_v47 = vpack.c.bf16 %v1709_v45, %v1708_v41  ;;  %v412_v48 = vpop.f32.mrb[3].mxu0  ;;  %v1971_v49 = vpack.c.bf16 %v1741_v46, %v1740_v42  ;;  %v540_v50 = vpop.f32.mrb[3].mxu1 }
  0xf9   :  { %v664_v51 = vpack.c.bf16 %v412_v48, %v409_v43  ;;  %v1973_v52 = vpack.c.bf16 %v540_v50, %v537_v44 }
  0xfa   :  { %1619 = vst [vmem:[%s2156_s2 + $0x8] sm:$0xff] %v665_v47   ;;  %1635 = vst [vmem:[%s2156_s2 + $0x88] sm:$0xff] %v1971_v49   ;;  %v986_v53 = vunpack.c.l.bf16 %v665_v47  ;;  %v987_v56 = vunpack.c.h.bf16 %v665_v47 }
  0xfb   :  { %1463 = vst [vmem:[%s2156_s2] sm:$0xff] %v664_v51   ;;  %v984_v54 = vunpack.c.l.bf16 %v664_v51  ;;  %v985_v55 = vunpack.c.h.bf16 %v664_v51  ;;  %1634 = vst [vmem:[%s2156_s2 + $0x80] sm:$0xff] %v1973_v52  }
  0xfc   :  { %v1119_v0 = vmul.f32 %v986_v53, %v986_v53  ;;  %v1120_v5 = vmul.f32 %v987_v56, %v987_v56 }
  0xfd   :  { %v1048_v57 = vadd.f32 %v985_v55, %v984_v54  ;;  %v1117_v58 = vmul.f32 %v984_v54, %v984_v54  ;;  %v1118_v59 = vmul.f32 %v985_v55, %v985_v55  ;;  %v1712_v60 = vpop.f32.mrb[4].mxu0  ;;  %v1744_v61 = vpop.f32.mrb[4].mxu1 }
  0xfe   :  { %v425_v62 = vpop.f32.mrb[5].mxu0  ;;  %v553_v63 = vpop.f32.mrb[5].mxu1 }
  0xff   :  { %v1049_v1 = vadd.f32 %v1048_v57, %v986_v53  ;;  %v1181_v2 = vadd.f32 %v1118_v59, %v1117_v58  ;;  %v1713_v3 = vpop.f32.mrb[6].mxu0  ;;  %v1745_v4 = vpop.f32.mrb[6].mxu1 }
 0x100   :  { %v667_v6 = vpack.c.bf16 %v1713_v3, %v1712_v60  ;;  %v428_v7 = vpop.f32.mrb[7].mxu0  ;;  %v1989_v8 = vpack.c.bf16 %v1745_v4, %v1744_v61  ;;  %v556_v9 = vpop.f32.mrb[7].mxu1 }
 0x101   :  { %v1182_v10 = vadd.f32 %v1181_v2, %v1119_v0  ;;  %v666_v11 = vpack.c.bf16 %v428_v7, %v425_v62  ;;  %v1050_v12 = vadd.f32 %v1049_v1, %v987_v56  ;;  %v1991_v13 = vpack.c.bf16 %v556_v9, %v553_v63 }
 0x102   :  { %1621 = vst [vmem:[%s2156_s2 + $0x18] sm:$0xff] %v667_v6   ;;  %1637 = vst [vmem:[%s2156_s2 + $0x98] sm:$0xff] %v1989_v8   ;;  %v990_v17 = vunpack.c.l.bf16 %v667_v6  ;;  %v991_v22 = vunpack.c.h.bf16 %v667_v6 }
 0x103   :  { %1620 = vst [vmem:[%s2156_s2 + $0x10] sm:$0xff] %v666_v11   ;;  %v988_v14 = vunpack.c.l.bf16 %v666_v11  ;;  %v989_v15 = vunpack.c.h.bf16 %v666_v11  ;;  %v1183_v16 = vadd.f32 %v1182_v10, %v1120_v5  ;;  %1636 = vst [vmem:[%s2156_s2 + $0x90] sm:$0xff] %v1991_v13  }
 0x104   :  { %v1123_v30 = vmul.f32 %v990_v17, %v990_v17  ;;  %v1124_v39 = vmul.f32 %v991_v22, %v991_v22 }
 0x105   :  { %v1051_v18 = vadd.f32 %v1050_v12, %v988_v14  ;;  %v1121_v19 = vmul.f32 %v988_v14, %v988_v14  ;;  %v1716_v20 = vpop.f32.mrb[8].mxu0  ;;  %v1748_v21 = vpop.f32.mrb[8].mxu1  ;;  %v1122_v26 = vmul.f32 %v989_v15, %v989_v15 }
 0x106   :  { %v441_v23 = vpop.f32.mrb[9].mxu0  ;;  %v569_v24 = vpop.f32.mrb[9].mxu1 }
 0x107   :  { %v1052_v25 = vadd.f32 %v1051_v18, %v989_v15  ;;  %v1184_v27 = vadd.f32 %v1183_v16, %v1121_v19  ;;  %v1717_v28 = vpop.f32.mrb[10].mxu0  ;;  %v1749_v29 = vpop.f32.mrb[10].mxu1 }
 0x108   :  { %v669_v31 = vpack.c.bf16 %v1717_v28, %v1716_v20  ;;  %v444_v32 = vpop.f32.mrb[11].mxu0  ;;  %v2007_v33 = vpack.c.bf16 %v1749_v29, %v1748_v21  ;;  %v572_v34 = vpop.f32.mrb[11].mxu1 }
 0x109   :  { %v1053_v35 = vadd.f32 %v1052_v25, %v990_v17  ;;  %v1185_v36 = vadd.f32 %v1184_v27, %v1122_v26  ;;  %v668_v37 = vpack.c.bf16 %v444_v32, %v441_v23  ;;  %v2009_v38 = vpack.c.bf16 %v572_v34, %v569_v24 }
 0x10a   :  { %1623 = vst [vmem:[%s2156_s2 + $0x28] sm:$0xff] %v669_v31   ;;  %1639 = vst [vmem:[%s2156_s2 + $0xa8] sm:$0xff] %v2007_v33   ;;  %v994_v44 = vunpack.c.l.bf16 %v669_v31  ;;  %v995_v51 = vunpack.c.h.bf16 %v669_v31 }
 0x10b   :  { %v1186_v40 = vadd.f32 %v1185_v36, %v1123_v30  ;;  %1622 = vst [vmem:[%s2156_s2 + $0x20] sm:$0xff] %v668_v37   ;;  %v992_v41 = vunpack.c.l.bf16 %v668_v37  ;;  %v993_v42 = vunpack.c.h.bf16 %v668_v37  ;;  %v1054_v43 = vadd.f32 %v1053_v35, %v991_v22  ;;  %1638 = vst [vmem:[%s2156_s2 + $0xa0] sm:$0xff] %v2009_v38  }
 0x10c   :  { %v1127_v60 = vmul.f32 %v994_v44, %v994_v44  ;;  %v1128_v5 = vmul.f32 %v995_v51, %v995_v51 }
 0x10d   :  { %v1055_v45 = vadd.f32 %v1054_v43, %v992_v41  ;;  %v1125_v46 = vmul.f32 %v992_v41, %v992_v41  ;;  %v1187_v47 = vadd.f32 %v1186_v40, %v1124_v39  ;;  %v1720_v48 = vpop.f32.mrb[12].mxu0  ;;  %v1752_v50 = vpop.f32.mrb[12].mxu1  ;;  %v1126_v56 = vmul.f32 %v993_v42, %v993_v42 }
 0x10e   :  { %v457_v53 = vpop.f32.mrb[13].mxu0  ;;  %v585_v54 = vpop.f32.mrb[13].mxu1 }
 0x10f   :  { %v1056_v55 = vadd.f32 %v1055_v45, %v993_v42  ;;  %v1188_v57 = vadd.f32 %v1187_v47, %v1125_v46  ;;  %v1721_v58 = vpop.f32.mrb[14].mxu0  ;;  %v1753_v59 = vpop.f32.mrb[14].mxu1 }
 0x110   :  { %v671_v61 = vpack.c.bf16 %v1721_v58, %v1720_v48  ;;  %v460_v62 = vpop.f32.mrb[15].mxu0  ;;  %v2025_v63 = vpack.c.bf16 %v1753_v59, %v1752_v50  ;;  %v588_v0 = vpop.f32.mrb[15].mxu1 }
 0x111   :  { %v1057_v1 = vadd.f32 %v1056_v55, %v994_v44  ;;  %v1189_v2 = vadd.f32 %v1188_v57, %v1126_v56  ;;  %v670_v3 = vpack.c.bf16 %v460_v62, %v457_v53  ;;  %v2027_v4 = vpack.c.bf16 %v588_v0, %v585_v54 }
 0x112   :  { %1625 = vst [vmem:[%s2156_s2 + $0x38] sm:$0xff] %v671_v61   ;;  %1641 = vst [vmem:[%s2156_s2 + $0xb8] sm:$0xff] %v2025_v63   ;;  %v998_v11 = vunpack.c.l.bf16 %v671_v61  ;;  %v999_v18 = vunpack.c.h.bf16 %v671_v61 }
 0x113   :  { %v1190_v6 = vadd.f32 %v1189_v2, %v1127_v60  ;;  %1624 = vst [vmem:[%s2156_s2 + $0x30] sm:$0xff] %v670_v3   ;;  %v996_v7 = vunpack.c.l.bf16 %v670_v3  ;;  %v997_v9 = vunpack.c.h.bf16 %v670_v3  ;;  %v1058_v10 = vadd.f32 %v1057_v1, %v995_v51  ;;  %1640 = vst [vmem:[%s2156_s2 + $0xb0] sm:$0xff] %v2027_v4  }
 0x114   :  { %v1131_v26 = vmul.f32 %v998_v11, %v998_v11  ;;  %v1132_v36 = vmul.f32 %v999_v18, %v999_v18 }
 0x115   :  { %v1059_v12 = vadd.f32 %v1058_v10, %v996_v7  ;;  %v1129_v14 = vmul.f32 %v996_v7, %v996_v7  ;;  %v1191_v15 = vadd.f32 %v1190_v6, %v1128_v5  ;;  %v1724_v16 = vpop.f32.mrb[16].mxu0  ;;  %v1756_v17 = vpop.f32.mrb[16].mxu1  ;;  %v1130_v22 = vmul.f32 %v997_v9, %v997_v9 }
 0x116   :  { %v473_v19 = vpop.f32.mrb[17].mxu0  ;;  %v601_v20 = vpop.f32.mrb[17].mxu1 }
 0x117   :  { %v1060_v21 = vadd.f32 %v1059_v12, %v997_v9  ;;  %v1192_v23 = vadd.f32 %v1191_v15, %v1129_v14  ;;  %v1725_v24 = vpop.f32.mrb[18].mxu0  ;;  %v1757_v25 = vpop.f32.mrb[18].mxu1 }
 0x118   :  { %v673_v27 = vpack.c.bf16 %v1725_v24, %v1724_v16  ;;  %v476_v28 = vpop.f32.mrb[19].mxu0  ;;  %v2043_v29 = vpack.c.bf16 %v1757_v25, %v1756_v17  ;;  %v604_v30 = vpop.f32.mrb[19].mxu1 }
 0x119   :  { %v1061_v31 = vadd.f32 %v1060_v21, %v998_v11  ;;  %v1193_v32 = vadd.f32 %v1192_v23, %v1130_v22  ;;  %v672_v34 = vpack.c.bf16 %v476_v28, %v473_v19  ;;  %v2045_v35 = vpack.c.bf16 %v604_v30, %v601_v20 }
 0x11a   :  { %1627 = vst [vmem:[%s2156_s2 + $0x48] sm:$0xff] %v673_v27   ;;  %1643 = vst [vmem:[%s2156_s2 + $0xc8] sm:$0xff] %v2043_v29   ;;  %v1002_v42 = vunpack.c.l.bf16 %v673_v27  ;;  %v1003_v48 = vunpack.c.h.bf16 %v673_v27 }
 0x11b   :  { %v1194_v37 = vadd.f32 %v1193_v32, %v1131_v26  ;;  %1626 = vst [vmem:[%s2156_s2 + $0x40] sm:$0xff] %v672_v34   ;;  %v1000_v39 = vunpack.c.l.bf16 %v672_v34  ;;  %v1001_v40 = vunpack.c.h.bf16 %v672_v34  ;;  %v1062_v41 = vadd.f32 %v1061_v31, %v999_v18  ;;  %1642 = vst [vmem:[%s2156_s2 + $0xc0] sm:$0xff] %v2045_v35  }
 0x11c   :  { %v1135_v58 = vmul.f32 %v1002_v42, %v1002_v42  ;;  %v1136_v5 = vmul.f32 %v1003_v48, %v1003_v48 }
 0x11d   :  { %v1063_v43 = vadd.f32 %v1062_v41, %v1000_v39  ;;  %v1133_v44 = vmul.f32 %v1000_v39, %v1000_v39  ;;  %v1195_v45 = vadd.f32 %v1194_v37, %v1132_v36  ;;  %v1728_v46 = vpop.f32.mrb[20].mxu0  ;;  %v1760_v47 = vpop.f32.mrb[20].mxu1  ;;  %v1134_v54 = vmul.f32 %v1001_v40, %v1001_v40 }
 0x11e   :  { %v489_v50 = vpop.f32.mrb[21].mxu0  ;;  %v617_v51 = vpop.f32.mrb[21].mxu1 }
 0x11f   :  { %v1064_v53 = vadd.f32 %v1063_v43, %v1001_v40  ;;  %v1196_v55 = vadd.f32 %v1195_v45, %v1133_v44  ;;  %v1729_v56 = vpop.f32.mrb[22].mxu0  ;;  %v1761_v57 = vpop.f32.mrb[22].mxu1 }
 0x120   :  { %v675_v59 = vpack.c.bf16 %v1729_v56, %v1728_v46  ;;  %v492_v60 = vpop.f32.mrb[23].mxu0  ;;  %v2061_v61 = vpack.c.bf16 %v1761_v57, %v1760_v47  ;;  %v620_v62 = vpop.f32.mrb[23].mxu1 }
 0x121   :  { %v1065_v0 = vadd.f32 %v1064_v53, %v1002_v42  ;;  %v1197_v1 = vadd.f32 %v1196_v55, %v1134_v54  ;;  %v674_v2 = vpack.c.bf16 %v492_v60, %v489_v50  ;;  %v2063_v3 = vpack.c.bf16 %v620_v62, %v617_v51 }
 0x122   :  { %1629 = vst [vmem:[%s2156_s2 + $0x58] sm:$0xff] %v675_v59   ;;  %1645 = vst [vmem:[%s2156_s2 + $0xd8] sm:$0xff] %v2061_v61   ;;  %v1006_v11 = vunpack.c.l.bf16 %v675_v59  ;;  %v1007_v18 = vunpack.c.h.bf16 %v675_v59 }
 0x123   :  { %v1198_v6 = vadd.f32 %v1197_v1, %v1135_v58  ;;  %1628 = vst [vmem:[%s2156_s2 + $0x50] sm:$0xff] %v674_v2   ;;  %v1004_v7 = vunpack.c.l.bf16 %v674_v2  ;;  %v1005_v9 = vunpack.c.h.bf16 %v674_v2  ;;  %v1066_v10 = vadd.f32 %v1065_v0, %v1003_v48  ;;  %1644 = vst [vmem:[%s2156_s2 + $0xd0] sm:$0xff] %v2063_v3  }
 0x124   :  { %v1139_v26 = vmul.f32 %v1006_v11, %v1006_v11  ;;  %v1140_v39 = vmul.f32 %v1007_v18, %v1007_v18 }
 0x125   :  { %v1067_v12 = vadd.f32 %v1066_v10, %v1004_v7  ;;  %v1137_v14 = vmul.f32 %v1004_v7, %v1004_v7  ;;  %v1199_v15 = vadd.f32 %v1198_v6, %v1136_v5  ;;  %v1732_v16 = vpop.f32.mrb[24].mxu0  ;;  %v1764_v17 = vpop.f32.mrb[24].mxu1  ;;  %v1138_v22 = vmul.f32 %v1005_v9, %v1005_v9 }
 0x126   :  { %v505_v19 = vpop.f32.mrb[25].mxu0  ;;  %v633_v20 = vpop.f32.mrb[25].mxu1 }
 0x127   :  { %v1068_v21 = vadd.f32 %v1067_v12, %v1005_v9  ;;  %v1200_v23 = vadd.f32 %v1199_v15, %v1137_v14  ;;  %v1733_v24 = vpop.f32.mrb[26].mxu0  ;;  %v1765_v25 = vpop.f32.mrb[26].mxu1 }
 0x128   :  { %v677_v27 = vpack.c.bf16 %v1733_v24, %v1732_v16  ;;  %v508_v28 = vpop.f32.mrb[27].mxu0  ;;  %v2079_v30 = vpack.c.bf16 %v1765_v25, %v1764_v17  ;;  %v636_v31 = vpop.f32.mrb[27].mxu1 }
 0x129   :  { %v1069_v32 = vadd.f32 %v1068_v21, %v1006_v11  ;;  %v1201_v34 = vadd.f32 %v1200_v23, %v1138_v22  ;;  %v676_v36 = vpack.c.bf16 %v508_v28, %v505_v19  ;;  %v2081_v37 = vpack.c.bf16 %v636_v31, %v633_v20 }
 0x12a   :  { %1631 = vst [vmem:[%s2156_s2 + $0x68] sm:$0xff] %v677_v27   ;;  %1647 = vst [vmem:[%s2156_s2 + $0xe8] sm:$0xff] %v2079_v30   ;;  %v1010_v44 = vunpack.c.l.bf16 %v677_v27  ;;  %v1011_v51 = vunpack.c.h.bf16 %v677_v27  ;;  %v1016_v27 = vunpack.c.l.bf16 %v1973_v52 }
 0x12b   :  { %v1202_v40 = vadd.f32 %v1201_v34, %v1139_v26  ;;  %1630 = vst [vmem:[%s2156_s2 + $0x60] sm:$0xff] %v676_v36   ;;  %v1008_v41 = vunpack.c.l.bf16 %v676_v36  ;;  %v1009_v42 = vunpack.c.h.bf16 %v676_v36  ;;  %v1070_v43 = vadd.f32 %v1069_v32, %v1007_v18  ;;  %1646 = vst [vmem:[%s2156_s2 + $0xe0] sm:$0xff] %v2081_v37  }
 0x12c   :  { %v1143_v60 = vmul.f32 %v1010_v44, %v1010_v44  ;;  %v1144_v10 = vmul.f32 %v1011_v51, %v1011_v51  ;;  %v1017_v32 = vunpack.c.h.bf16 %v1973_v52  ;;  %v1018_v36 = vunpack.c.l.bf16 %v1971_v49 }
 0x12d   :  { %v1071_v45 = vadd.f32 %v1070_v43, %v1008_v41  ;;  %v1141_v46 = vmul.f32 %v1008_v41, %v1008_v41  ;;  %v1203_v47 = vadd.f32 %v1202_v40, %v1140_v39  ;;  %v1736_v48 = vpop.f32.mrb[28].mxu0  ;;  %v1768_v50 = vpop.f32.mrb[28].mxu1  ;;  %v1142_v56 = vmul.f32 %v1009_v42, %v1009_v42 }
 0x12e   :  { %v521_v53 = vpop.f32.mrb[29].mxu0  ;;  %v649_v54 = vpop.f32.mrb[29].mxu1  ;;  %v1149_v40 = vmul.f32 %v1016_v27, %v1016_v27  ;;  %v1021_v52 = vunpack.c.h.bf16 %v1991_v13 }
 0x12f   :  { %v1072_v55 = vadd.f32 %v1071_v45, %v1009_v42  ;;  %v1204_v57 = vadd.f32 %v1203_v47, %v1141_v46  ;;  %v1737_v58 = vpop.f32.mrb[30].mxu0  ;;  %v1769_v59 = vpop.f32.mrb[30].mxu1  ;;  %v1019_v42 = vunpack.c.h.bf16 %v1971_v49  ;;  %v1151_v46 = vmul.f32 %v1018_v36, %v1018_v36 }
 0x130   :  { %v679_v62 = vpack.c.bf16 %v1737_v58, %v1736_v48  ;;  %v524_v0 = vpop.f32.mrb[31].mxu0  ;;  %v2097_v1 = vpack.c.bf16 %v1769_v59, %v1768_v50  ;;  %v652_v2 = vpop.f32.mrb[31].mxu1  ;;  %v1020_v50 = vunpack.c.l.bf16 %v1991_v13  ;;  %v1023_v49 = vunpack.c.h.bf16 %v1989_v8 }
 0x131   :  { %v1073_v5 = vadd.f32 %v1072_v55, %v1010_v44  ;;  %v1205_v6 = vadd.f32 %v1204_v57, %v1142_v56  ;;  %v678_v7 = vpack.c.bf16 %v524_v0, %v521_v53  ;;  %v2099_v9 = vpack.c.bf16 %v652_v2, %v649_v54 }
 0x132   :  { %1633 = vst [vmem:[%s2156_s2 + $0x78] sm:$0xff] %v679_v62   ;;  %1649 = vst [vmem:[%s2156_s2 + $0xf8] sm:$0xff] %v2097_v1   ;;  %v1014_v16 = vunpack.c.l.bf16 %v679_v62  ;;  %v1015_v20 = vunpack.c.h.bf16 %v679_v62  ;;  %v1150_v44 = vmul.f32 %v1017_v32, %v1017_v32  ;;  %v1022_v55 = vunpack.c.l.bf16 %v1989_v8 }
 0x133   :  { %v1206_v11 = vadd.f32 %v1205_v6, %v1143_v60  ;;  %1632 = vst [vmem:[%s2156_s2 + $0x70] sm:$0xff] %v678_v7   ;;  %v1012_v12 = vunpack.c.l.bf16 %v678_v7  ;;  %v1013_v14 = vunpack.c.h.bf16 %v678_v7  ;;  %v1074_v15 = vadd.f32 %v1073_v5, %v1011_v51  ;;  %1648 = vst [vmem:[%s2156_s2 + $0xf0] sm:$0xff] %v2099_v9  }
 0x134   :  { %v1147_v24 = vmul.f32 %v1014_v16, %v1014_v16  ;;  %v1148_v28 = vmul.f32 %v1015_v20, %v1015_v20  ;;  %v1152_v51 = vmul.f32 %v1019_v42, %v1019_v42  ;;  %v1153_v57 = vmul.f32 %v1020_v50, %v1020_v50 }
 0x135   :  { %v1075_v17 = vadd.f32 %v1074_v15, %v1012_v12  ;;  %v1145_v18 = vmul.f32 %v1012_v12, %v1012_v12  ;;  %v1207_v19 = vadd.f32 %v1206_v11, %v1144_v10  ;;  %v1146_v22 = vmul.f32 %v1013_v14, %v1013_v14 }
 0x136   :  { %v1154_v60 = vmul.f32 %v1021_v52, %v1021_v52  ;;  %v1155_v0 = vmul.f32 %v1022_v55, %v1022_v55  ;;  %v1024_v6 = vunpack.c.l.bf16 %v2009_v38  ;;  %v1156_v7 = vmul.f32 %v1023_v49, %v1023_v49 }
 0x137   :  { %v1076_v21 = vadd.f32 %v1075_v17, %v1013_v14  ;;  %v1208_v23 = vadd.f32 %v1207_v19, %v1145_v18  ;;  %v1025_v13 = vunpack.c.h.bf16 %v2009_v38  ;;  %v1026_v12 = vunpack.c.l.bf16 %v2007_v33 }
 0x138   :  { %v1157_v15 = vmul.f32 %v1024_v6, %v1024_v6  ;;  %v1027_v8 = vunpack.c.h.bf16 %v2007_v33  ;;  %v1029_v38 = vunpack.c.h.bf16 %v2027_v4  ;;  %v1031_v33 = vunpack.c.h.bf16 %v2025_v63 }
 0x139   :  { %v1077_v25 = vadd.f32 %v1076_v21, %v1014_v16  ;;  %v1209_v26 = vadd.f32 %v1208_v23, %v1146_v22  ;;  %v1158_v18 = vmul.f32 %v1025_v13, %v1025_v13  ;;  %v1028_v23 = vunpack.c.l.bf16 %v2027_v4 }
 0x13a   :  { %v1033_v4 = vunpack.c.h.bf16 %v2045_v35 }
 0x13b   :  { %v1210_v31 = vadd.f32 %v1209_v26, %v1147_v24  ;;  %v1078_v34 = vadd.f32 %v1077_v25, %v1015_v20  ;;  %v1159_v20 = vmul.f32 %v1026_v12, %v1026_v12  ;;  %v1160_v24 = vmul.f32 %v1027_v8, %v1027_v8 }
 0x13d   :  { %v1079_v39 = vadd.f32 %v1078_v34, %v1016_v27  ;;  %v1211_v41 = vadd.f32 %v1210_v31, %v1148_v28  ;;  %v1030_v27 = vunpack.c.l.bf16 %v2025_v63  ;;  %v1161_v31 = vmul.f32 %v1028_v23, %v1028_v23 }
 0x13e   :  { %v1035_v63 = vunpack.c.h.bf16 %v2043_v29 }
 0x13f   :  { %v1080_v43 = vadd.f32 %v1079_v39, %v1017_v32  ;;  %v1212_v45 = vadd.f32 %v1211_v41, %v1149_v40  ;;  %v1163_v40 = vmul.f32 %v1030_v27, %v1030_v27 }
 0x141   :  { %v1081_v47 = vadd.f32 %v1080_v43, %v1018_v36  ;;  %v1213_v48 = vadd.f32 %v1212_v45, %v1150_v44  ;;  %v1162_v36 = vmul.f32 %v1029_v38, %v1029_v38  ;;  %v1032_v43 = vunpack.c.l.bf16 %v2045_v35 }
 0x142   :  { %v1164_v44 = vmul.f32 %v1031_v33, %v1031_v33  ;;  %v1037_v35 = vunpack.c.h.bf16 %v2063_v3 }
 0x143   :  { %v1214_v53 = vadd.f32 %v1213_v48, %v1151_v46  ;;  %v1082_v54 = vadd.f32 %v1081_v47, %v1019_v42  ;;  %v1034_v47 = vunpack.c.l.bf16 %v2043_v29  ;;  %v1039_v29 = vunpack.c.h.bf16 %v2061_v61 }
 0x145   :  { %v1083_v56 = vadd.f32 %v1082_v54, %v1020_v50  ;;  %v1215_v58 = vadd.f32 %v1214_v53, %v1152_v51  ;;  %v1165_v50 = vmul.f32 %v1032_v43, %v1032_v43 }
 0x147   :  { %v1084_v59 = vadd.f32 %v1083_v56, %v1021_v52  ;;  %v1216_v62 = vadd.f32 %v1215_v58, %v1153_v57  ;;  %v1166_v52 = vmul.f32 %v1033_v4, %v1033_v4  ;;  %v1036_v58 = vunpack.c.l.bf16 %v2063_v3 }
 0x148   :  { %v1041_v3 = vunpack.c.h.bf16 %v2081_v37 }
 0x149   :  { %v1085_v2 = vadd.f32 %v1084_v59, %v1022_v55  ;;  %v1217_v5 = vadd.f32 %v1216_v62, %v1154_v60  ;;  %v1167_v55 = vmul.f32 %v1034_v47, %v1034_v47  ;;  %v1038_v62 = vunpack.c.l.bf16 %v2061_v61 }
 0x14a   :  { %v1043_v61 = vunpack.c.h.bf16 %v2079_v30 }
 0x14b   :  { %v1218_v10 = vadd.f32 %v1217_v5, %v1155_v0  ;;  %v1086_v11 = vadd.f32 %v1085_v2, %v1023_v49  ;;  %v1168_v49 = vmul.f32 %v1035_v63, %v1035_v63  ;;  %v1169_v2 = vmul.f32 %v1036_v58, %v1036_v58 }
 0x14d   :  { %v1087_v14 = vadd.f32 %v1086_v11, %v1024_v6  ;;  %v1219_v16 = vadd.f32 %v1218_v10, %v1156_v7  ;;  %v1170_v7 = vmul.f32 %v1037_v35, %v1037_v35 }
 0x14f   :  { %v1088_v17 = vadd.f32 %v1087_v14, %v1025_v13  ;;  %v1220_v19 = vadd.f32 %v1219_v16, %v1157_v15  ;;  %v1171_v13 = vmul.f32 %v1038_v62, %v1038_v62  ;;  %v1040_v14 = vunpack.c.l.bf16 %v2081_v37 }
 0x150   :  { %v1172_v15 = vmul.f32 %v1039_v29, %v1039_v29  ;;  %v1045_v37 = vunpack.c.h.bf16 %v2099_v9 }
 0x151   :  { %v1089_v21 = vadd.f32 %v1088_v17, %v1026_v12  ;;  %v1221_v22 = vadd.f32 %v1220_v19, %v1158_v18  ;;  %v1042_v17 = vunpack.c.l.bf16 %v2079_v30  ;;  %v1173_v19 = vmul.f32 %v1040_v14, %v1040_v14 }
 0x152   :  { %v1047_v30 = vunpack.c.h.bf16 %v2097_v1 }
 0x153   :  { %v1222_v25 = vadd.f32 %v1221_v22, %v1159_v20  ;;  %v1090_v26 = vadd.f32 %v1089_v21, %v1027_v8  ;;  %v1174_v22 = vmul.f32 %v1041_v3, %v1041_v3 }
 0x155   :  { %v1091_v28 = vadd.f32 %v1090_v26, %v1028_v23  ;;  %v1223_v32 = vadd.f32 %v1222_v25, %v1160_v24  ;;  %v1175_v24 = vmul.f32 %v1042_v17, %v1042_v17  ;;  %v1044_v26 = vunpack.c.l.bf16 %v2099_v9 }
 0x157   :  { %v1092_v34 = vadd.f32 %v1091_v28, %v1029_v38  ;;  %v1224_v39 = vadd.f32 %v1223_v32, %v1161_v31  ;;  %v1046_v32 = vunpack.c.l.bf16 %v2097_v1 }
 0x159   :  { %v1093_v41 = vadd.f32 %v1092_v34, %v1030_v27  ;;  %v1225_v42 = vadd.f32 %v1224_v39, %v1162_v36  ;;  %v1176_v27 = vmul.f32 %v1043_v61, %v1043_v61  ;;  %v1177_v34 = vmul.f32 %v1044_v26, %v1044_v26 }
 0x15b   :  { %v1226_v45 = vadd.f32 %v1225_v42, %v1163_v40  ;;  %v1094_v46 = vadd.f32 %v1093_v41, %v1031_v33  ;;  %v1178_v40 = vmul.f32 %v1045_v37, %v1045_v37  ;;  %v1179_v42 = vmul.f32 %v1046_v32, %v1046_v32 }
 0x15d   :  { %v1095_v48 = vadd.f32 %v1094_v46, %v1032_v43  ;;  %v1227_v51 = vadd.f32 %v1226_v45, %v1164_v44  ;;  %v1180_v45 = vmul.f32 %v1047_v30, %v1047_v30 }
 0x15f   :  { %v1096_v53 = vadd.f32 %v1095_v48, %v1033_v4  ;;  %v1228_v54 = vadd.f32 %v1227_v51, %v1165_v50 }
 0x161   :  { %v1097_v56 = vadd.f32 %v1096_v53, %v1034_v47  ;;  %v1229_v57 = vadd.f32 %v1228_v54, %v1166_v52 }
 0x163   :  { %v1230_v59 = vadd.f32 %v1229_v57, %v1167_v55  ;;  %v1098_v60 = vadd.f32 %v1097_v56, %v1035_v63 }
 0x165   :  { %v1099_v0 = vadd.f32 %v1098_v60, %v1036_v58  ;;  %v1231_v5 = vadd.f32 %v1230_v59, %v1168_v49  ;;  %v1252_v58 = vld [vmem:[%s2155_s3] sm:$0x3] }
 0x167   :  { %v1100_v6 = vadd.f32 %v1099_v0, %v1037_v35  ;;  %v1232_v10 = vadd.f32 %v1231_v5, %v1169_v2 }
 0x169   :  { %v1101_v11 = vadd.f32 %v1100_v6, %v1038_v62  ;;  %v1233_v12 = vadd.f32 %v1232_v10, %v1170_v7 }
 0x16b   :  { %v1234_v16 = vadd.f32 %v1233_v12, %v1171_v13  ;;  %v1102_v8 = vadd.f32 %v1101_v11, %v1039_v29 }
 0x16d   :  { %v1103_v18 = vadd.f32 %v1102_v8, %v1040_v14  ;;  %v1235_v20 = vadd.f32 %v1234_v16, %v1172_v15 }
 0x16f   :  { %v1104_v21 = vadd.f32 %v1103_v18, %v1041_v3  ;;  %v1236_v23 = vadd.f32 %v1235_v20, %v1173_v19 }
 0x171   :  { %v1105_v25 = vadd.f32 %v1104_v21, %v1042_v17  ;;  %v1237_v38 = vadd.f32 %v1236_v23, %v1174_v22 }
 0x173   :  { %v1238_v28 = vadd.f32 %v1237_v38, %v1175_v24  ;;  %v1106_v31 = vadd.f32 %v1105_v25, %v1043_v61 }
 0x175   :  { %v1107_v33 = vadd.f32 %v1106_v31, %v1044_v26  ;;  %v1239_v36 = vadd.f32 %v1238_v28, %v1176_v27 }
 0x177   :  { %v1108_v39 = vadd.f32 %v1107_v33, %v1045_v37  ;;  %v1240_v41 = vadd.f32 %v1239_v36, %v1177_v34 }
 0x179   :  { %v1109_v43 = vadd.f32 %v1108_v39, %v1046_v32  ;;  %v1241_v44 = vadd.f32 %v1240_v41, %v1178_v40 }
 0x17b   :  { %v1110_v4 = vadd.f32 %v1109_v43, %v1047_v30  ;;  %v1242_v46 = vadd.f32 %v1241_v44, %v1179_v42 }
 0x17d   :  { %v1111_v47 = vrot.slane %v1110_v4, 4  ;;  %v1243_v48 = vadd.f32 %v1242_v46, %v1180_v45 }
 0x17f   :  { %v1112_v9 = vadd.f32 %v1111_v47, %v1110_v4  ;;  %v1244_v50 = vrot.slane %v1243_v48, 4 }
 0x181   :  { %v1113_v51 = vrot.slane %v1112_v9, 2  ;;  %v1245_v63 = vadd.f32 %v1244_v50, %v1243_v48 }
 0x183   :  { %v1114_v53 = vadd.f32 %v1113_v51, %v1112_v9  ;;  %v1246_v52 = vrot.slane %v1245_v63, 2 }
 0x185   :  { %v1115_v54 = vrot.slane %v1114_v53, 1  ;;  %v1247_v55 = vadd.f32 %v1246_v52, %v1245_v63 }
 0x187   :  { %v1248_v1 = vrot.slane %v1247_v55, 1  ;;  %v1116_v56 = vadd.f32 %v1115_v54, %v1114_v53 }
 0x189   :  { %v1249_v57 = vadd.f32 %v1248_v1, %v1247_v55 }
 0x18b   :  { %v1251_v49 = vsel %vm1250_vm0, %v1116_v56, %v1249_v57 }
 0x18c   :  { %v1253_v59 = vadd.f32 %v1252_v58, %v1251_v49 }
 0x18e   :  { %1254 = vst [vmem:[%s2155_s3] sm:$0x3] %v1253_v59 }

// kernel: _lambda_.7
= control target key start
LH: loop header
LB: loop body
LE: loop exit
PB: predicated region body
PF: predicated region fallthrough
CT: control target
= control target key end

     0   :  { %s1466_s0 = inlined_call_operand.vmem [shape: bf16[512,128], index: 0, kind: input, shape index: {}]   ;;  %s1467_s1 = inlined_call_operand.vmem [shape: f32[2,128], index: 1, kind: input, shape index: {}]   ;;  %s1468_s2 = inlined_call_operand.vmem [shape: bf16[512,128], index: 2, kind: input, shape index: {}]   ;;  %s1469_s3 = inlined_call_operand.vmem [shape: f32[512,128], index: 3, kind: output, shape index: {}]  }
   0x1   :  { %v607_v0 = vld [vmem:[%s1466_s0] sm:$0xff]   ;;  %v862_v5 = vld [vmem:[%s1466_s0 + $0x8] sm:$0xff]   ;;  %v863_v12 = vld [vmem:[%s1466_s0 + $0x10] sm:$0xff]  }
   0x2   :  { %v950_v1 = vld [vmem:[%s1467_s1] ss:$0 sm:$0xff]  ;;  %v608_v2 = vunpack.c.l.bf16 %v607_v0  ;;  %v609_v4 = vunpack.c.h.bf16 %v607_v0  ;;  %v893_v6 = vld [vmem:[%s1468_s2 + $0x8] sm:$0xff]   ;;  %v964_v7 = vld [vmem:[%s1467_s1 + $0x1] ss:$0 sm:$0xff]  ;;  %v612_v10 = vunpack.c.l.bf16 %v862_v5  ;;  %v613_v16 = vunpack.c.h.bf16 %v862_v5 }
   0x3   :  { %v735_v3 = vld [vmem:[%s1468_s2] sm:$0xff]   ;;  %v740_v11 = vunpack.c.l.bf16 %v893_v6  ;;  %v894_v13 = vld [vmem:[%s1468_s2 + $0x10] sm:$0xff]   ;;  %v741_v17 = vunpack.c.h.bf16 %v893_v6  ;;  %v864_v18 = vld [vmem:[%s1466_s0 + $0x18] sm:$0xff]   ;;  %v616_v20 = vunpack.c.l.bf16 %v863_v12  ;;  %v617_v22 = vunpack.c.h.bf16 %v863_v12 }
   0x4   :  { %v736_v8 = vunpack.c.l.bf16 %v735_v3  ;;  %v737_v9 = vunpack.c.h.bf16 %v735_v3  ;;  %v147_v14 = vmul.f32 %v608_v2, %v950_v1  ;;  %v148_v15 = vmul.f32 %v609_v4, %v950_v1  ;;  %v895_v23 = vld [vmem:[%s1468_s2 + $0x18] sm:$0xff]   ;;  %v865_v40 = vld [vmem:[%s1466_s0 + $0x20] sm:$0xff]   ;;  %v866_v54 = vld [vmem:[%s1466_s0 + $0x28] sm:$0xff]  }
   0x5   :  { %v149_v19 = vmul.f32 %v612_v10, %v950_v1  ;;  %v744_v21 = vunpack.c.l.bf16 %v894_v13  ;;  %v150_v26 = vmul.f32 %v613_v16, %v950_v1  ;;  %v745_v27 = vunpack.c.h.bf16 %v894_v13  ;;  %v896_v45 = vld [vmem:[%s1468_s2 + $0x20] sm:$0xff]   ;;  %v897_v55 = vld [vmem:[%s1468_s2 + $0x28] sm:$0xff]   ;;  %v867_v0 = vld [vmem:[%s1466_s0 + $0x30] sm:$0xff]  }
   0x6   :  { %v216_v24 = vadd.f32 %v964_v7, %v147_v14  ;;  %v217_v25 = vadd.f32 %v964_v7, %v148_v15  ;;  %v151_v29 = vmul.f32 %v616_v20, %v950_v1  ;;  %v152_v30 = vmul.f32 %v617_v22, %v950_v1  ;;  %v898_v2 = vld [vmem:[%s1468_s2 + $0x30] sm:$0xff]   ;;  %v868_v16 = vld [vmem:[%s1466_s0 + $0x38] sm:$0xff]  }
   0x7   :  { %v218_v28 = vadd.f32 %v964_v7, %v149_v19  ;;  %v620_v31 = vunpack.c.l.bf16 %v864_v18  ;;  %v219_v34 = vadd.f32 %v964_v7, %v150_v26  ;;  %v748_v35 = vunpack.c.l.bf16 %v895_v23 }
   0x8   :  { %v408_v32 = vadd.f32 %v736_v8, %v216_v24  ;;  %v409_v33 = vadd.f32 %v737_v9, %v217_v25  ;;  %v220_v37 = vadd.f32 %v964_v7, %v151_v29  ;;  %v221_v38 = vadd.f32 %v964_v7, %v152_v30 }
   0x9   :  { %v410_v36 = vadd.f32 %v740_v11, %v218_v28  ;;  %v153_v39 = vmul.f32 %v620_v31, %v950_v1  ;;  %v411_v43 = vadd.f32 %v741_v17, %v219_v34  ;;  %v621_v44 = vunpack.c.h.bf16 %v864_v18  ;;  %v869_v34 = vld [vmem:[%s1466_s0 + $0x40] sm:$0xff]  }
   0xa   :  { %v472_v41 = vmax.f32 %v408_v32, 0.0  ;;  %v473_v42 = vmax.f32 %v409_v33, 0.0  ;;  %v412_v47 = vadd.f32 %v744_v21, %v220_v37  ;;  %v413_v48 = vadd.f32 %v745_v27, %v221_v38  ;;  %v899_v21 = vld [vmem:[%s1468_s2 + $0x38] sm:$0xff]  }
   0xb   :  { %v474_v46 = vmax.f32 %v410_v36, 0.0  ;;  %v222_v49 = vadd.f32 %v964_v7, %v153_v39  ;;  %v475_v50 = vmax.f32 %v411_v43, 0.0  ;;  %v154_v51 = vmul.f32 %v621_v44, %v950_v1  ;;  %v900_v39 = vld [vmem:[%s1468_s2 + $0x40] sm:$0xff]  }
   0xc   :  { %536 = vst [vmem:[%s1469_s3] sm:$0xff] %v472_v41  ;;  %537 = vst [vmem:[%s1469_s3 + $0x8] sm:$0xff] %v473_v42  ;;  %v749_v52 = vunpack.c.h.bf16 %v895_v23  ;;  %v624_v53 = vunpack.c.l.bf16 %v865_v40  ;;  %v476_v56 = vmax.f32 %v412_v47, 0.0  ;;  %v477_v57 = vmax.f32 %v413_v48, 0.0  ;;  %v870_v48 = vld [vmem:[%s1466_s0 + $0x48] sm:$0xff]  }
   0xd   :  { %538 = vst [vmem:[%s1469_s3 + $0x10] sm:$0xff] %v474_v46  ;;  %v414_v58 = vadd.f32 %v748_v35, %v222_v49  ;;  %v752_v59 = vunpack.c.l.bf16 %v896_v45  ;;  %539 = vst [vmem:[%s1469_s3 + $0x18] sm:$0xff] %v475_v50  ;;  %v223_v60 = vadd.f32 %v964_v7, %v154_v51  ;;  %v625_v62 = vunpack.c.h.bf16 %v865_v40  ;;  %v901_v49 = vld [vmem:[%s1468_s2 + $0x48] sm:$0xff]  }
   0xe   :  { %v155_v61 = vmul.f32 %v624_v53, %v950_v1  ;;  %v753_v63 = vunpack.c.h.bf16 %v896_v45  ;;  %540 = vst [vmem:[%s1469_s3 + $0x20] sm:$0xff] %v476_v56  ;;  %541 = vst [vmem:[%s1469_s3 + $0x28] sm:$0xff] %v477_v57  ;;  %v628_v4 = vunpack.c.l.bf16 %v866_v54  ;;  %v756_v5 = vunpack.c.l.bf16 %v897_v55 }
   0xf   :  { %v478_v3 = vmax.f32 %v414_v58, 0.0  ;;  %v629_v6 = vunpack.c.h.bf16 %v866_v54  ;;  %v415_v8 = vadd.f32 %v749_v52, %v223_v60  ;;  %v156_v10 = vmul.f32 %v625_v62, %v950_v1  ;;  %v871_v58 = vld [vmem:[%s1466_s0 + $0x50] sm:$0xff]  }
  0x10   :  { %v224_v9 = vadd.f32 %v964_v7, %v155_v61  ;;  %v757_v11 = vunpack.c.h.bf16 %v897_v55  ;;  %v157_v12 = vmul.f32 %v628_v4, %v950_v1  ;;  %v632_v14 = vunpack.c.l.bf16 %v867_v0 }
  0x11   :  { %542 = vst [vmem:[%s1469_s3 + $0x30] sm:$0xff] %v478_v3  ;;  %v158_v13 = vmul.f32 %v629_v6, %v950_v1  ;;  %v760_v15 = vunpack.c.l.bf16 %v898_v2  ;;  %v479_v17 = vmax.f32 %v415_v8, 0.0  ;;  %v225_v19 = vadd.f32 %v964_v7, %v156_v10  ;;  %v872_v10 = vld [vmem:[%s1466_s0 + $0x58] sm:$0xff]  }
  0x12   :  { %v416_v18 = vadd.f32 %v752_v59, %v224_v9  ;;  %v633_v20 = vunpack.c.h.bf16 %v867_v0  ;;  %v226_v22 = vadd.f32 %v964_v7, %v157_v12  ;;  %v159_v24 = vmul.f32 %v632_v14, %v950_v1 }
  0x13   :  { %v227_v23 = vadd.f32 %v964_v7, %v158_v13  ;;  %v761_v25 = vunpack.c.h.bf16 %v898_v2  ;;  %543 = vst [vmem:[%s1469_s3 + $0x38] sm:$0xff] %v479_v17  ;;  %v417_v27 = vadd.f32 %v753_v63, %v225_v19  ;;  %v636_v29 = vunpack.c.l.bf16 %v868_v16  ;;  %v902_v63 = vld [vmem:[%s1468_s2 + $0x50] sm:$0xff]   ;;  %v903_v19 = vld [vmem:[%s1468_s2 + $0x58] sm:$0xff]  }
  0x14   :  { %v480_v26 = vmax.f32 %v416_v18, 0.0  ;;  %v160_v28 = vmul.f32 %v633_v20, %v950_v1  ;;  %v418_v30 = vadd.f32 %v756_v5, %v226_v22  ;;  %v228_v32 = vadd.f32 %v964_v7, %v159_v24 }
  0x15   :  { %v419_v31 = vadd.f32 %v757_v11, %v227_v23  ;;  %v764_v33 = vunpack.c.l.bf16 %v899_v21  ;;  %v481_v35 = vmax.f32 %v417_v27, 0.0  ;;  %v161_v37 = vmul.f32 %v636_v29, %v950_v1 }
  0x16   :  { %544 = vst [vmem:[%s1469_s3 + $0x40] sm:$0xff] %v480_v26  ;;  %v229_v36 = vadd.f32 %v964_v7, %v160_v28  ;;  %v637_v38 = vunpack.c.h.bf16 %v868_v16  ;;  %v482_v40 = vmax.f32 %v418_v30, 0.0  ;;  %v420_v42 = vadd.f32 %v760_v15, %v228_v32  ;;  %v873_v28 = vld [vmem:[%s1466_s0 + $0x60] sm:$0xff]  }
  0x17   :  { %v483_v41 = vmax.f32 %v419_v31, 0.0  ;;  %v765_v43 = vunpack.c.h.bf16 %v899_v21  ;;  %545 = vst [vmem:[%s1469_s3 + $0x48] sm:$0xff] %v481_v35  ;;  %v230_v45 = vadd.f32 %v964_v7, %v161_v37  ;;  %v640_v47 = vunpack.c.l.bf16 %v869_v34 }
  0x18   :  { %v421_v44 = vadd.f32 %v761_v25, %v229_v36  ;;  %v162_v46 = vmul.f32 %v637_v38, %v950_v1  ;;  %546 = vst [vmem:[%s1469_s3 + $0x50] sm:$0xff] %v482_v40  ;;  %v484_v50 = vmax.f32 %v420_v42, 0.0  ;;  %v768_v51 = vunpack.c.l.bf16 %v900_v39  ;;  %v874_v42 = vld [vmem:[%s1466_s0 + $0x68] sm:$0xff]  }
  0x19   :  { %547 = vst [vmem:[%s1469_s3 + $0x58] sm:$0xff] %v483_v41  ;;  %v641_v52 = vunpack.c.h.bf16 %v869_v34  ;;  %v769_v53 = vunpack.c.h.bf16 %v900_v39  ;;  %v422_v55 = vadd.f32 %v764_v33, %v230_v45  ;;  %v163_v57 = vmul.f32 %v640_v47, %v950_v1  ;;  %v904_v33 = vld [vmem:[%s1468_s2 + $0x60] sm:$0xff]  }
  0x1a   :  { %v485_v54 = vmax.f32 %v421_v44, 0.0  ;;  %v231_v56 = vadd.f32 %v964_v7, %v162_v46  ;;  %548 = vst [vmem:[%s1469_s3 + $0x60] sm:$0xff] %v484_v50  ;;  %v644_v60 = vunpack.c.l.bf16 %v870_v48  ;;  %v772_v61 = vunpack.c.l.bf16 %v901_v49 }
  0x1b   :  { %v164_v59 = vmul.f32 %v641_v52, %v950_v1  ;;  %v645_v62 = vunpack.c.h.bf16 %v870_v48  ;;  %v486_v0 = vmax.f32 %v422_v55, 0.0  ;;  %v232_v3 = vadd.f32 %v964_v7, %v163_v57  ;;  %v875_v52 = vld [vmem:[%s1466_s0 + $0x70] sm:$0xff]  }
  0x1c   :  { %549 = vst [vmem:[%s1469_s3 + $0x68] sm:$0xff] %v485_v54  ;;  %v423_v2 = vadd.f32 %v765_v43, %v231_v56  ;;  %v773_v4 = vunpack.c.h.bf16 %v901_v49  ;;  %v165_v6 = vmul.f32 %v644_v60, %v950_v1  ;;  %v648_v9 = vunpack.c.l.bf16 %v871_v58  ;;  %v905_v43 = vld [vmem:[%s1468_s2 + $0x68] sm:$0xff]   ;;  %v906_v57 = vld [vmem:[%s1468_s2 + $0x70] sm:$0xff]  }
  0x1d   :  { %v233_v5 = vadd.f32 %v964_v7, %v164_v59  ;;  %v166_v8 = vmul.f32 %v645_v62, %v950_v1  ;;  %550 = vst [vmem:[%s1469_s3 + $0x70] sm:$0xff] %v486_v0  ;;  %v424_v12 = vadd.f32 %v768_v51, %v232_v3  ;;  %v776_v13 = vunpack.c.l.bf16 %v902_v63  ;;  %v876_v3 = vld [vmem:[%s1466_s0 + $0x78] sm:$0xff]  }
  0x1e   :  { %v487_v11 = vmax.f32 %v423_v2, 0.0  ;;  %v649_v14 = vunpack.c.h.bf16 %v871_v58  ;;  %v234_v16 = vadd.f32 %v964_v7, %v165_v6  ;;  %v167_v18 = vmul.f32 %v648_v9, %v950_v1 }
  0x1f   :  { %v425_v15 = vadd.f32 %v769_v53, %v233_v5  ;;  %v235_v17 = vadd.f32 %v964_v7, %v166_v8  ;;  %v488_v20 = vmax.f32 %v424_v12, 0.0  ;;  %v777_v22 = vunpack.c.h.bf16 %v902_v63 }
  0x20   :  { %551 = vst [vmem:[%s1469_s3 + $0x78] sm:$0xff] %v487_v11  ;;  %v168_v21 = vmul.f32 %v649_v14, %v950_v1  ;;  %v652_v23 = vunpack.c.l.bf16 %v872_v10  ;;  %v426_v25 = vadd.f32 %v772_v61, %v234_v16  ;;  %v236_v27 = vadd.f32 %v964_v7, %v167_v18 }
  0x21   :  { %v489_v24 = vmax.f32 %v425_v15, 0.0  ;;  %v427_v26 = vadd.f32 %v773_v4, %v235_v17  ;;  %552 = vst [vmem:[%s1469_s3 + $0x80] sm:$0xff] %v488_v20  ;;  %v780_v31 = vunpack.c.l.bf16 %v903_v19  ;;  %v653_v32 = vunpack.c.h.bf16 %v872_v10 }
  0x22   :  { %v237_v29 = vadd.f32 %v964_v7, %v168_v21  ;;  %v169_v30 = vmul.f32 %v652_v23, %v950_v1  ;;  %v490_v34 = vmax.f32 %v426_v25, 0.0  ;;  %v428_v36 = vadd.f32 %v776_v13, %v236_v27  ;;  %v907_v13 = vld [vmem:[%s1468_s2 + $0x78] sm:$0xff]   ;;  %v908_v27 = vld [vmem:[%s1468_s2 + $0x80] sm:$0xff]  }
  0x23   :  { %553 = vst [vmem:[%s1469_s3 + $0x88] sm:$0xff] %v489_v24  ;;  %v491_v35 = vmax.f32 %v427_v26, 0.0  ;;  %v781_v37 = vunpack.c.h.bf16 %v903_v19  ;;  %v170_v40 = vmul.f32 %v653_v32, %v950_v1  ;;  %v656_v41 = vunpack.c.l.bf16 %v873_v28 }
  0x24   :  { %v429_v38 = vadd.f32 %v777_v22, %v237_v29  ;;  %v238_v39 = vadd.f32 %v964_v7, %v169_v30  ;;  %554 = vst [vmem:[%s1469_s3 + $0x90] sm:$0xff] %v490_v34  ;;  %v492_v44 = vmax.f32 %v428_v36, 0.0  ;;  %v784_v45 = vunpack.c.l.bf16 %v904_v33  ;;  %v877_v22 = vld [vmem:[%s1466_s0 + $0x80] sm:$0xff]   ;;  %v878_v36 = vld [vmem:[%s1466_s0 + $0x88] sm:$0xff]  }
  0x25   :  { %555 = vst [vmem:[%s1469_s3 + $0x98] sm:$0xff] %v491_v35  ;;  %v657_v46 = vunpack.c.h.bf16 %v873_v28  ;;  %v785_v47 = vunpack.c.h.bf16 %v904_v33  ;;  %v239_v50 = vadd.f32 %v964_v7, %v170_v40  ;;  %v171_v51 = vmul.f32 %v656_v41, %v950_v1 }
  0x26   :  { %v493_v48 = vmax.f32 %v429_v38, 0.0  ;;  %v430_v49 = vadd.f32 %v780_v31, %v238_v39  ;;  %556 = vst [vmem:[%s1469_s3 + $0xa0] sm:$0xff] %v492_v44  ;;  %v660_v54 = vunpack.c.l.bf16 %v874_v42  ;;  %v788_v55 = vunpack.c.l.bf16 %v905_v43 }
  0x27   :  { %v172_v53 = vmul.f32 %v657_v46, %v950_v1  ;;  %v661_v56 = vunpack.c.h.bf16 %v874_v42  ;;  %v431_v59 = vadd.f32 %v781_v37, %v239_v50  ;;  %v240_v60 = vadd.f32 %v964_v7, %v171_v51  ;;  %v909_v37 = vld [vmem:[%s1468_s2 + $0x88] sm:$0xff]   ;;  %v879_v46 = vld [vmem:[%s1466_s0 + $0x90] sm:$0xff]  }
  0x28   :  { %557 = vst [vmem:[%s1469_s3 + $0xa8] sm:$0xff] %v493_v48  ;;  %v494_v58 = vmax.f32 %v430_v49, 0.0  ;;  %v789_v61 = vunpack.c.h.bf16 %v905_v43  ;;  %v173_v63 = vmul.f32 %v660_v54, %v950_v1  ;;  %v664_v2 = vunpack.c.l.bf16 %v875_v52  ;;  %v910_v51 = vld [vmem:[%s1468_s2 + $0x90] sm:$0xff]  }
  0x29   :  { %v241_v62 = vadd.f32 %v964_v7, %v172_v53  ;;  %v174_v0 = vmul.f32 %v661_v56, %v950_v1  ;;  %v495_v4 = vmax.f32 %v431_v59, 0.0  ;;  %v432_v5 = vadd.f32 %v784_v45, %v240_v60  ;;  %v880_v60 = vld [vmem:[%s1466_s0 + $0x98] sm:$0xff]  }
  0x2a   :  { %558 = vst [vmem:[%s1469_s3 + $0xb0] sm:$0xff] %v494_v58  ;;  %v792_v6 = vunpack.c.l.bf16 %v906_v57  ;;  %v665_v8 = vunpack.c.h.bf16 %v875_v52  ;;  %v242_v10 = vadd.f32 %v964_v7, %v173_v63  ;;  %v175_v12 = vmul.f32 %v664_v2, %v950_v1 }
  0x2b   :  { %v433_v9 = vadd.f32 %v785_v47, %v241_v62  ;;  %v243_v11 = vadd.f32 %v964_v7, %v174_v0  ;;  %559 = vst [vmem:[%s1469_s3 + $0xb8] sm:$0xff] %v495_v4  ;;  %v496_v14 = vmax.f32 %v432_v5, 0.0  ;;  %v793_v16 = vunpack.c.h.bf16 %v906_v57 }
  0x2c   :  { %v176_v15 = vmul.f32 %v665_v8, %v950_v1  ;;  %v668_v17 = vunpack.c.l.bf16 %v876_v3  ;;  %v434_v19 = vadd.f32 %v788_v55, %v242_v10  ;;  %v244_v21 = vadd.f32 %v964_v7, %v175_v12 }
  0x2d   :  { %v497_v18 = vmax.f32 %v433_v9, 0.0  ;;  %v435_v20 = vadd.f32 %v789_v61, %v243_v11  ;;  %560 = vst [vmem:[%s1469_s3 + $0xc0] sm:$0xff] %v496_v14  ;;  %v796_v25 = vunpack.c.l.bf16 %v907_v13  ;;  %v669_v26 = vunpack.c.h.bf16 %v876_v3 }
  0x2e   :  { %v245_v23 = vadd.f32 %v964_v7, %v176_v15  ;;  %v177_v24 = vmul.f32 %v668_v17, %v950_v1  ;;  %v498_v28 = vmax.f32 %v434_v19, 0.0  ;;  %v436_v30 = vadd.f32 %v792_v6, %v244_v21  ;;  %v911_v6 = vld [vmem:[%s1468_s2 + $0x98] sm:$0xff]   ;;  %v912_v21 = vld [vmem:[%s1468_s2 + $0xa0] sm:$0xff]  }
  0x2f   :  { %561 = vst [vmem:[%s1469_s3 + $0xc8] sm:$0xff] %v497_v18  ;;  %v499_v29 = vmax.f32 %v435_v20, 0.0  ;;  %v797_v31 = vunpack.c.h.bf16 %v907_v13  ;;  %v178_v34 = vmul.f32 %v669_v26, %v950_v1  ;;  %v672_v35 = vunpack.c.l.bf16 %v877_v22 }
  0x30   :  { %v437_v32 = vadd.f32 %v793_v16, %v245_v23  ;;  %v246_v33 = vadd.f32 %v964_v7, %v177_v24  ;;  %562 = vst [vmem:[%s1469_s3 + $0xd0] sm:$0xff] %v498_v28  ;;  %v500_v38 = vmax.f32 %v436_v30, 0.0  ;;  %v800_v39 = vunpack.c.l.bf16 %v908_v27  ;;  %v881_v16 = vld [vmem:[%s1466_s0 + $0xa0] sm:$0xff]   ;;  %v882_v30 = vld [vmem:[%s1466_s0 + $0xa8] sm:$0xff]  }
  0x31   :  { %563 = vst [vmem:[%s1469_s3 + $0xd8] sm:$0xff] %v499_v29  ;;  %v673_v40 = vunpack.c.h.bf16 %v877_v22  ;;  %v801_v41 = vunpack.c.h.bf16 %v908_v27  ;;  %v247_v44 = vadd.f32 %v964_v7, %v178_v34  ;;  %v179_v45 = vmul.f32 %v672_v35, %v950_v1 }
  0x32   :  { %v501_v42 = vmax.f32 %v437_v32, 0.0  ;;  %v438_v43 = vadd.f32 %v796_v25, %v246_v33  ;;  %564 = vst [vmem:[%s1469_s3 + $0xe0] sm:$0xff] %v500_v38  ;;  %v676_v48 = vunpack.c.l.bf16 %v878_v36  ;;  %v804_v49 = vunpack.c.l.bf16 %v909_v37 }
  0x33   :  { %v180_v47 = vmul.f32 %v673_v40, %v950_v1  ;;  %v677_v50 = vunpack.c.h.bf16 %v878_v36  ;;  %v439_v53 = vadd.f32 %v797_v31, %v247_v44  ;;  %v248_v54 = vadd.f32 %v964_v7, %v179_v45  ;;  %v913_v31 = vld [vmem:[%s1468_s2 + $0xa8] sm:$0xff]   ;;  %v883_v40 = vld [vmem:[%s1466_s0 + $0xb0] sm:$0xff]  }
  0x34   :  { %565 = vst [vmem:[%s1469_s3 + $0xe8] sm:$0xff] %v501_v42  ;;  %v502_v52 = vmax.f32 %v438_v43, 0.0  ;;  %v805_v55 = vunpack.c.h.bf16 %v909_v37  ;;  %v181_v57 = vmul.f32 %v676_v48, %v950_v1  ;;  %v680_v59 = vunpack.c.l.bf16 %v879_v46  ;;  %v914_v45 = vld [vmem:[%s1468_s2 + $0xb0] sm:$0xff]  }
  0x35   :  { %v249_v56 = vadd.f32 %v964_v7, %v180_v47  ;;  %v182_v58 = vmul.f32 %v677_v50, %v950_v1  ;;  %v503_v61 = vmax.f32 %v439_v53, 0.0  ;;  %v440_v62 = vadd.f32 %v800_v39, %v248_v54  ;;  %v884_v54 = vld [vmem:[%s1466_s0 + $0xb8] sm:$0xff]  }
  0x36   :  { %566 = vst [vmem:[%s1469_s3 + $0xf0] sm:$0xff] %v502_v52  ;;  %v808_v63 = vunpack.c.l.bf16 %v910_v51  ;;  %v681_v0 = vunpack.c.h.bf16 %v879_v46  ;;  %v250_v3 = vadd.f32 %v964_v7, %v181_v57  ;;  %v183_v5 = vmul.f32 %v680_v59, %v950_v1 }
  0x37   :  { %v441_v2 = vadd.f32 %v801_v41, %v249_v56  ;;  %v251_v4 = vadd.f32 %v964_v7, %v182_v58  ;;  %567 = vst [vmem:[%s1469_s3 + $0xf8] sm:$0xff] %v503_v61  ;;  %v504_v8 = vmax.f32 %v440_v62, 0.0  ;;  %v809_v10 = vunpack.c.h.bf16 %v910_v51 }
  0x38   :  { %v184_v9 = vmul.f32 %v681_v0, %v950_v1  ;;  %v684_v11 = vunpack.c.l.bf16 %v880_v60  ;;  %v442_v13 = vadd.f32 %v804_v49, %v250_v3  ;;  %v252_v15 = vadd.f32 %v964_v7, %v183_v5 }
  0x39   :  { %v505_v12 = vmax.f32 %v441_v2, 0.0  ;;  %v443_v14 = vadd.f32 %v805_v55, %v251_v4  ;;  %568 = vst [vmem:[%s1469_s3 + $0x100] sm:$0xff] %v504_v8  ;;  %v812_v19 = vunpack.c.l.bf16 %v911_v6  ;;  %v685_v20 = vunpack.c.h.bf16 %v880_v60 }
  0x3a   :  { %v253_v17 = vadd.f32 %v964_v7, %v184_v9  ;;  %v185_v18 = vmul.f32 %v684_v11, %v950_v1  ;;  %v506_v22 = vmax.f32 %v442_v13, 0.0  ;;  %v444_v24 = vadd.f32 %v808_v63, %v252_v15  ;;  %v915_v63 = vld [vmem:[%s1468_s2 + $0xb8] sm:$0xff]   ;;  %v916_v15 = vld [vmem:[%s1468_s2 + $0xc0] sm:$0xff]  }
  0x3b   :  { %569 = vst [vmem:[%s1469_s3 + $0x108] sm:$0xff] %v505_v12  ;;  %v507_v23 = vmax.f32 %v443_v14, 0.0  ;;  %v813_v25 = vunpack.c.h.bf16 %v911_v6  ;;  %v186_v28 = vmul.f32 %v685_v20, %v950_v1  ;;  %v688_v29 = vunpack.c.l.bf16 %v881_v16 }
  0x3c   :  { %v445_v26 = vadd.f32 %v809_v10, %v253_v17  ;;  %v254_v27 = vadd.f32 %v964_v7, %v185_v18  ;;  %570 = vst [vmem:[%s1469_s3 + $0x110] sm:$0xff] %v506_v22  ;;  %v508_v32 = vmax.f32 %v444_v24, 0.0  ;;  %v816_v33 = vunpack.c.l.bf16 %v912_v21  ;;  %v885_v10 = vld [vmem:[%s1466_s0 + $0xc0] sm:$0xff]   ;;  %v886_v24 = vld [vmem:[%s1466_s0 + $0xc8] sm:$0xff]  }
  0x3d   :  { %571 = vst [vmem:[%s1469_s3 + $0x118] sm:$0xff] %v507_v23  ;;  %v689_v34 = vunpack.c.h.bf16 %v881_v16  ;;  %v817_v35 = vunpack.c.h.bf16 %v912_v21  ;;  %v255_v38 = vadd.f32 %v964_v7, %v186_v28  ;;  %v187_v39 = vmul.f32 %v688_v29, %v950_v1 }
  0x3e   :  { %v509_v36 = vmax.f32 %v445_v26, 0.0  ;;  %v446_v37 = vadd.f32 %v812_v19, %v254_v27  ;;  %572 = vst [vmem:[%s1469_s3 + $0x120] sm:$0xff] %v508_v32  ;;  %v692_v42 = vunpack.c.l.bf16 %v882_v30  ;;  %v820_v43 = vunpack.c.l.bf16 %v913_v31 }
  0x3f   :  { %v188_v41 = vmul.f32 %v689_v34, %v950_v1  ;;  %v693_v44 = vunpack.c.h.bf16 %v882_v30  ;;  %v447_v47 = vadd.f32 %v813_v25, %v255_v38  ;;  %v256_v48 = vadd.f32 %v964_v7, %v187_v39  ;;  %v917_v25 = vld [vmem:[%s1468_s2 + $0xc8] sm:$0xff]   ;;  %v887_v34 = vld [vmem:[%s1466_s0 + $0xd0] sm:$0xff]  }
  0x40   :  { %573 = vst [vmem:[%s1469_s3 + $0x128] sm:$0xff] %v509_v36  ;;  %v510_v46 = vmax.f32 %v446_v37, 0.0  ;;  %v821_v49 = vunpack.c.h.bf16 %v913_v31  ;;  %v189_v51 = vmul.f32 %v692_v42, %v950_v1  ;;  %v696_v53 = vunpack.c.l.bf16 %v883_v40  ;;  %v918_v39 = vld [vmem:[%s1468_s2 + $0xd0] sm:$0xff]  }
  0x41   :  { %v257_v50 = vadd.f32 %v964_v7, %v188_v41  ;;  %v190_v52 = vmul.f32 %v693_v44, %v950_v1  ;;  %v511_v55 = vmax.f32 %v447_v47, 0.0  ;;  %v448_v56 = vadd.f32 %v816_v33, %v256_v48  ;;  %v888_v48 = vld [vmem:[%s1466_s0 + $0xd8] sm:$0xff]  }
  0x42   :  { %574 = vst [vmem:[%s1469_s3 + $0x130] sm:$0xff] %v510_v46  ;;  %v824_v57 = vunpack.c.l.bf16 %v914_v45  ;;  %v697_v58 = vunpack.c.h.bf16 %v883_v40  ;;  %v258_v60 = vadd.f32 %v964_v7, %v189_v51  ;;  %v191_v62 = vmul.f32 %v696_v53, %v950_v1 }
  0x43   :  { %v449_v59 = vadd.f32 %v817_v35, %v257_v50  ;;  %v259_v61 = vadd.f32 %v964_v7, %v190_v52  ;;  %575 = vst [vmem:[%s1469_s3 + $0x138] sm:$0xff] %v511_v55  ;;  %v512_v0 = vmax.f32 %v448_v56, 0.0  ;;  %v825_v3 = vunpack.c.h.bf16 %v914_v45 }
  0x44   :  { %v192_v2 = vmul.f32 %v697_v58, %v950_v1  ;;  %v700_v4 = vunpack.c.l.bf16 %v884_v54  ;;  %v450_v6 = vadd.f32 %v820_v43, %v258_v60  ;;  %v260_v9 = vadd.f32 %v964_v7, %v191_v62 }
  0x45   :  { %v513_v5 = vmax.f32 %v449_v59, 0.0  ;;  %v451_v8 = vadd.f32 %v821_v49, %v259_v61  ;;  %576 = vst [vmem:[%s1469_s3 + $0x140] sm:$0xff] %v512_v0  ;;  %v828_v13 = vunpack.c.l.bf16 %v915_v63  ;;  %v701_v14 = vunpack.c.h.bf16 %v884_v54 }
  0x46   :  { %v261_v11 = vadd.f32 %v964_v7, %v192_v2  ;;  %v193_v12 = vmul.f32 %v700_v4, %v950_v1  ;;  %v514_v16 = vmax.f32 %v450_v6, 0.0  ;;  %v452_v18 = vadd.f32 %v824_v57, %v260_v9  ;;  %v919_v57 = vld [vmem:[%s1468_s2 + $0xd8] sm:$0xff]   ;;  %v920_v9 = vld [vmem:[%s1468_s2 + $0xe0] sm:$0xff]  }
  0x47   :  { %577 = vst [vmem:[%s1469_s3 + $0x148] sm:$0xff] %v513_v5  ;;  %v515_v17 = vmax.f32 %v451_v8, 0.0  ;;  %v829_v19 = vunpack.c.h.bf16 %v915_v63  ;;  %v194_v22 = vmul.f32 %v701_v14, %v950_v1  ;;  %v704_v23 = vunpack.c.l.bf16 %v885_v10 }
  0x48   :  { %v453_v20 = vadd.f32 %v825_v3, %v261_v11  ;;  %v262_v21 = vadd.f32 %v964_v7, %v193_v12  ;;  %578 = vst [vmem:[%s1469_s3 + $0x150] sm:$0xff] %v514_v16  ;;  %v516_v26 = vmax.f32 %v452_v18, 0.0  ;;  %v832_v27 = vunpack.c.l.bf16 %v916_v15  ;;  %v889_v3 = vld [vmem:[%s1466_s0 + $0xe0] sm:$0xff]   ;;  %v890_v18 = vld [vmem:[%s1466_s0 + $0xe8] sm:$0xff]  }
  0x49   :  { %579 = vst [vmem:[%s1469_s3 + $0x158] sm:$0xff] %v515_v17  ;;  %v705_v28 = vunpack.c.h.bf16 %v885_v10  ;;  %v833_v29 = vunpack.c.h.bf16 %v916_v15  ;;  %v263_v32 = vadd.f32 %v964_v7, %v194_v22  ;;  %v195_v33 = vmul.f32 %v704_v23, %v950_v1 }
  0x4a   :  { %v517_v30 = vmax.f32 %v453_v20, 0.0  ;;  %v454_v31 = vadd.f32 %v828_v13, %v262_v21  ;;  %580 = vst [vmem:[%s1469_s3 + $0x160] sm:$0xff] %v516_v26  ;;  %v708_v36 = vunpack.c.l.bf16 %v886_v24  ;;  %v836_v37 = vunpack.c.l.bf16 %v917_v25 }
  0x4b   :  { %v196_v35 = vmul.f32 %v705_v28, %v950_v1  ;;  %v709_v38 = vunpack.c.h.bf16 %v886_v24  ;;  %v455_v41 = vadd.f32 %v829_v19, %v263_v32  ;;  %v264_v42 = vadd.f32 %v964_v7, %v195_v33  ;;  %v921_v19 = vld [vmem:[%s1468_s2 + $0xe8] sm:$0xff]   ;;  %v891_v28 = vld [vmem:[%s1466_s0 + $0xf0] sm:$0xff]  }
  0x4c   :  { %581 = vst [vmem:[%s1469_s3 + $0x168] sm:$0xff] %v517_v30  ;;  %v518_v40 = vmax.f32 %v454_v31, 0.0  ;;  %v837_v43 = vunpack.c.h.bf16 %v917_v25  ;;  %v197_v45 = vmul.f32 %v708_v36, %v950_v1  ;;  %v712_v47 = vunpack.c.l.bf16 %v887_v34  ;;  %v922_v33 = vld [vmem:[%s1468_s2 + $0xf0] sm:$0xff]  }
  0x4d   :  { %v265_v44 = vadd.f32 %v964_v7, %v196_v35  ;;  %v198_v46 = vmul.f32 %v709_v38, %v950_v1  ;;  %v519_v49 = vmax.f32 %v455_v41, 0.0  ;;  %v456_v50 = vadd.f32 %v832_v27, %v264_v42  ;;  %v892_v42 = vld [vmem:[%s1466_s0 + $0xf8] sm:$0xff]  }
  0x4e   :  { %582 = vst [vmem:[%s1469_s3 + $0x170] sm:$0xff] %v518_v40  ;;  %v840_v51 = vunpack.c.l.bf16 %v918_v39  ;;  %v713_v52 = vunpack.c.h.bf16 %v887_v34  ;;  %v266_v54 = vadd.f32 %v964_v7, %v197_v45  ;;  %v199_v56 = vmul.f32 %v712_v47, %v950_v1 }
  0x4f   :  { %v457_v53 = vadd.f32 %v833_v29, %v265_v44  ;;  %v267_v55 = vadd.f32 %v964_v7, %v198_v46  ;;  %583 = vst [vmem:[%s1469_s3 + $0x178] sm:$0xff] %v519_v49  ;;  %v520_v58 = vmax.f32 %v456_v50, 0.0  ;;  %v841_v60 = vunpack.c.h.bf16 %v918_v39 }
  0x50   :  { %v200_v59 = vmul.f32 %v713_v52, %v950_v1  ;;  %v716_v61 = vunpack.c.l.bf16 %v888_v48  ;;  %v458_v63 = vadd.f32 %v836_v37, %v266_v54  ;;  %v268_v2 = vadd.f32 %v964_v7, %v199_v56 }
  0x51   :  { %v521_v62 = vmax.f32 %v457_v53, 0.0  ;;  %v459_v0 = vadd.f32 %v837_v43, %v267_v55  ;;  %584 = vst [vmem:[%s1469_s3 + $0x180] sm:$0xff] %v520_v58  ;;  %v844_v6 = vunpack.c.l.bf16 %v919_v57  ;;  %v717_v8 = vunpack.c.h.bf16 %v888_v48 }
  0x52   :  { %v269_v4 = vadd.f32 %v964_v7, %v200_v59  ;;  %v201_v5 = vmul.f32 %v716_v61, %v950_v1  ;;  %v522_v10 = vmax.f32 %v458_v63, 0.0  ;;  %v460_v12 = vadd.f32 %v840_v51, %v268_v2  ;;  %v923_v51 = vld [vmem:[%s1468_s2 + $0xf8] sm:$0xff]  }
  0x53   :  { %585 = vst [vmem:[%s1469_s3 + $0x188] sm:$0xff] %v521_v62  ;;  %v523_v11 = vmax.f32 %v459_v0, 0.0  ;;  %v845_v13 = vunpack.c.h.bf16 %v919_v57  ;;  %v202_v16 = vmul.f32 %v717_v8, %v950_v1  ;;  %v720_v17 = vunpack.c.l.bf16 %v889_v3 }
  0x54   :  { %v461_v14 = vadd.f32 %v841_v60, %v269_v4  ;;  %v270_v15 = vadd.f32 %v964_v7, %v201_v5  ;;  %586 = vst [vmem:[%s1469_s3 + $0x190] sm:$0xff] %v522_v10  ;;  %v524_v20 = vmax.f32 %v460_v12, 0.0  ;;  %v848_v21 = vunpack.c.l.bf16 %v920_v9 }
  0x55   :  { %587 = vst [vmem:[%s1469_s3 + $0x198] sm:$0xff] %v523_v11  ;;  %v721_v22 = vunpack.c.h.bf16 %v889_v3  ;;  %v849_v23 = vunpack.c.h.bf16 %v920_v9  ;;  %v271_v26 = vadd.f32 %v964_v7, %v202_v16  ;;  %v203_v27 = vmul.f32 %v720_v17, %v950_v1 }
  0x56   :  { %v525_v24 = vmax.f32 %v461_v14, 0.0  ;;  %v462_v25 = vadd.f32 %v844_v6, %v270_v15  ;;  %588 = vst [vmem:[%s1469_s3 + $0x1a0] sm:$0xff] %v524_v20  ;;  %v724_v30 = vunpack.c.l.bf16 %v890_v18  ;;  %v852_v31 = vunpack.c.l.bf16 %v921_v19 }
  0x57   :  { %v204_v29 = vmul.f32 %v721_v22, %v950_v1  ;;  %v725_v32 = vunpack.c.h.bf16 %v890_v18  ;;  %v463_v35 = vadd.f32 %v845_v13, %v271_v26  ;;  %v272_v36 = vadd.f32 %v964_v7, %v203_v27 }
  0x58   :  { %589 = vst [vmem:[%s1469_s3 + $0x1a8] sm:$0xff] %v525_v24  ;;  %v526_v34 = vmax.f32 %v462_v25, 0.0  ;;  %v853_v37 = vunpack.c.h.bf16 %v921_v19  ;;  %v205_v39 = vmul.f32 %v724_v30, %v950_v1  ;;  %v728_v41 = vunpack.c.l.bf16 %v891_v28 }
  0x59   :  { %v273_v38 = vadd.f32 %v964_v7, %v204_v29  ;;  %v206_v40 = vmul.f32 %v725_v32, %v950_v1  ;;  %v527_v43 = vmax.f32 %v463_v35, 0.0  ;;  %v464_v44 = vadd.f32 %v848_v21, %v272_v36 }
  0x5a   :  { %590 = vst [vmem:[%s1469_s3 + $0x1b0] sm:$0xff] %v526_v34  ;;  %v856_v45 = vunpack.c.l.bf16 %v922_v33  ;;  %v729_v46 = vunpack.c.h.bf16 %v891_v28  ;;  %v274_v48 = vadd.f32 %v964_v7, %v205_v39  ;;  %v207_v50 = vmul.f32 %v728_v41, %v950_v1 }
  0x5b   :  { %v465_v47 = vadd.f32 %v849_v23, %v273_v38  ;;  %v275_v49 = vadd.f32 %v964_v7, %v206_v40  ;;  %591 = vst [vmem:[%s1469_s3 + $0x1b8] sm:$0xff] %v527_v43  ;;  %v528_v52 = vmax.f32 %v464_v44, 0.0  ;;  %v857_v54 = vunpack.c.h.bf16 %v922_v33 }
  0x5c   :  { %v208_v53 = vmul.f32 %v729_v46, %v950_v1  ;;  %v732_v55 = vunpack.c.l.bf16 %v892_v42  ;;  %v466_v57 = vadd.f32 %v852_v31, %v274_v48  ;;  %v276_v59 = vadd.f32 %v964_v7, %v207_v50 }
  0x5d   :  { %v529_v56 = vmax.f32 %v465_v47, 0.0  ;;  %v467_v58 = vadd.f32 %v853_v37, %v275_v49  ;;  %592 = vst [vmem:[%s1469_s3 + $0x1c0] sm:$0xff] %v528_v52  ;;  %v860_v62 = vunpack.c.l.bf16 %v923_v51  ;;  %v733_v63 = vunpack.c.h.bf16 %v892_v42 }
  0x5e   :  { %v277_v60 = vadd.f32 %v964_v7, %v208_v53  ;;  %v209_v61 = vmul.f32 %v732_v55, %v950_v1  ;;  %v530_v0 = vmax.f32 %v466_v57, 0.0  ;;  %v468_v3 = vadd.f32 %v856_v45, %v276_v59 }
  0x5f   :  { %593 = vst [vmem:[%s1469_s3 + $0x1c8] sm:$0xff] %v529_v56  ;;  %v531_v2 = vmax.f32 %v467_v58, 0.0  ;;  %v210_v6 = vmul.f32 %v733_v63, %v950_v1  ;;  %v861_v8 = vunpack.c.h.bf16 %v923_v51 }
  0x60   :  { %v469_v4 = vadd.f32 %v857_v54, %v277_v60  ;;  %v278_v5 = vadd.f32 %v964_v7, %v209_v61  ;;  %594 = vst [vmem:[%s1469_s3 + $0x1d0] sm:$0xff] %v530_v0  ;;  %v532_v9 = vmax.f32 %v468_v3, 0.0 }
  0x61   :  { %595 = vst [vmem:[%s1469_s3 + $0x1d8] sm:$0xff] %v531_v2  ;;  %v279_v12 = vadd.f32 %v964_v7, %v210_v6 }
  0x62   :  { %v533_v10 = vmax.f32 %v469_v4, 0.0  ;;  %v470_v11 = vadd.f32 %v860_v62, %v278_v5  ;;  %596 = vst [vmem:[%s1469_s3 + $0x1e0] sm:$0xff] %v532_v9 }
  0x63   :  { %v471_v13 = vadd.f32 %v861_v8, %v279_v12 }
  0x64   :  { %597 = vst [vmem:[%s1469_s3 + $0x1e8] sm:$0xff] %v533_v10  ;;  %v534_v1 = vmax.f32 %v470_v11, 0.0 }
  0x65   :  { %v535_v14 = vmax.f32 %v471_v13, 0.0 }
  0x66   :  { %598 = vst [vmem:[%s1469_s3 + $0x1f0] sm:$0xff] %v534_v1 }
  0x67   :  { %599 = vst [vmem:[%s1469_s3 + $0x1f8] sm:$0xff] %v535_v14 }

</bundles_post_ra>
